<compile_context>
chip_gen: v5e
topology: v5e:2x2
jax: 0.10.0
libtpu: 0.0.40
codegen_flags: <defaults>
</compile_context>

<pallas_src>
import jax
import jax.numpy as jnp
from jax import lax
from jax.experimental import pallas as pl
from jax.experimental.pallas import tpu as pltpu

EMBED_DIM = 32  # memory_dim = time_dim = embedding_dim = 32 in the module


def _cdiv(a, b):
    return (a + b - 1) // b


def _round_up(x, m):
    return ((x + m - 1) // m) * m


# ---------------------------------------------------------------------------
# Kernel A: fused lambda_src / lambda_dst over every node.
#   out[r, n] = psi[r] * softplus( lam[r, :] . emb[n, :] )
# where lam is already scaled by 1/(psi + 1e-7) in the wrapper and rows
# [0, B) are the src side, rows [B, 2B) the dst side.
# ---------------------------------------------------------------------------
def _node_intensity_kernel(lam_ref, psi_ref, emb_ref, out_ref):
    lam = lam_ref[...]                      # (2B, D)  grid-invariant, resident
    psi = psi_ref[...]                      # (2B, 1)
    emb = emb_ref[...]                      # (TN, D)  streamed node-table slab
    # A @ B^T on the MXU (contract the shared D axis) -> no wrapper transpose
    # of the node table is needed.
    x = lax.dot_general(lam, emb, (((1,), (1,)), ((), ())),
                        preferred_element_type=jnp.float32)        # (2B, TN)
    # psi * softplus(x), stable form max(x,0) + log(1 + exp(-|x|)).
    out_ref[...] = psi * (jnp.maximum(x, 0.0)
                          + jnp.log(1.0 + jnp.exp(-jnp.abs(x))))


def _node_tile(N, twoB, D, vmem_budget=12 << 20, cap=8192):
    # Double-buffered bytes per node-tile lane:
    #   emb block: 2 bufs * D * 4 ; out block: 2 bufs * 2B * 4.
    per_tn = 2 * D * 4 + 2 * twoB * 4
    tn_max = max(128, min(cap, (vmem_budget // per_tn) // 128 * 128))
    n_tiles = _cdiv(_round_up(N, 128), tn_max)
    if N >= 256 and n_tiles < 2:
        n_tiles = 2     # >=2 grid steps so both v7x TensorCores get node tiles
    return _round_up(_cdiv(N, n_tiles), 128)


def compute_node_intensities(lam2, psi2, all_embeddings):
    twoB, D = lam2.shape
    N = all_embeddings.shape[0]
    TN = _node_tile(N, twoB, D)
    grid = _cdiv(N, TN)
    return pl.pallas_call(
        _node_intensity_kernel,
        out_shape=jax.ShapeDtypeStruct((twoB, N), jnp.float32),
        grid=(grid,),
        in_specs=[pl.BlockSpec((twoB, D), lambda n: (0, 0)),
                  pl.BlockSpec((twoB, 1), lambda n: (0, 0)),
                  pl.BlockSpec((TN, D), lambda n: (n, 0))],
        out_specs=pl.BlockSpec((twoB, TN), lambda n: (0, n)),
        compiler_params=pltpu.CompilerParams(
            dimension_semantics=("parallel",),
            vmem_limit_bytes=32 * 1024 * 1024),
    )(lam2, psi2, all_embeddings.astype(jnp.float32))


# ---------------------------------------------------------------------------
# Kernel B: fused return-time intensity over (batch, num_samples), lane-major.
#   x_side[b, s] = sum_d h_side[b, d, s] * v_side[b, d] + c_side[b]
#   out[b, s]    = 0.5 * psi[b] * (softplus(x_src) + softplus(x_dst))
# v/c are already scaled by 1/(psi + 1e-7) in the wrapper.
# ---------------------------------------------------------------------------
def _tp_intensity_kernel(vs_ref, vd_ref, cs_ref, cd_ref, psi_ref,
                         hs_ref, hd_ref, out_ref):
    vs = vs_ref[...]            # (B, D)
    vd = vd_ref[...]            # (B, D)
    cs = cs_ref[...]            # (B, 1)
    cd = cd_ref[...]            # (B, 1)
    psi = psi_ref[...]          # (B, 1)
    hs = hs_ref[...]            # (B, D, TS)  sample axis on lanes
    hd = hd_ref[...]            # (B, D, TS)

    xs = jnp.sum(hs * vs[:, :, None], axis=1) + cs        # (B, TS)
    xd = jnp.sum(hd * vd[:, :, None], axis=1) + cd        # (B, TS)

    def _sp(x):
        return jnp.maximum(x, 0.0) + jnp.log(1.0 + jnp.exp(-jnp.abs(x)))

    out_ref[...] = 0.5 * psi * (_sp(xs) + _sp(xd))


def _sample_tile(S, B, D, vmem_budget=12 << 20, cap=2048):
    # Double-buffered bytes per sample-tile lane:
    #   two h streams: 2 streams * 2 bufs * B * D * 4 ; out: 2 bufs * B * 4.
    per_ts = 2 * 2 * B * D * 4 + 2 * B * 4
    ts_max = max(128, min(cap, (vmem_budget // per_ts) // 128 * 128))
    n_tiles = _cdiv(_round_up(S, 128), ts_max)
    if S >= 256 and n_tiles < 2:
        n_tiles = 2
    return _round_up(_cdiv(S, n_tiles), 128)


def compute_tp_intensity(v_s, v_d, c_s, c_d, psi_b, h_src_tp, h_dst_tp):
    S, B, D = h_src_tp.shape
    TS = _sample_tile(S, B, D)
    grid = _cdiv(S, TS)

    # Lane-major (B, D, S): sample axis on lanes -> full vreg occupancy on the
    # streamed elementwise path and lane-dense output stores.
    h_s = jnp.transpose(h_src_tp.astype(jnp.float32), (1, 2, 0))   # (B, D, S)
    h_d = jnp.transpose(h_dst_tp.astype(jnp.float32), (1, 2, 0))

    out = pl.pallas_call(
        _tp_intensity_kernel,
        out_shape=jax.ShapeDtypeStruct((B, S), jnp.float32),
        grid=(grid,),
        in_specs=[pl.BlockSpec((B, D), lambda s: (0, 0)),
                  pl.BlockSpec((B, D), lambda s: (0, 0)),
                  pl.BlockSpec((B, 1), lambda s: (0, 0)),
                  pl.BlockSpec((B, 1), lambda s: (0, 0)),
                  pl.BlockSpec((B, 1), lambda s: (0, 0)),
                  pl.BlockSpec((B, D, TS), lambda s: (0, 0, s)),
                  pl.BlockSpec((B, D, TS), lambda s: (0, 0, s))],
        out_specs=pl.BlockSpec((B, TS), lambda s: (0, s)),
        compiler_params=pltpu.CompilerParams(
            dimension_semantics=("parallel",),
            vmem_limit_bytes=32 * 1024 * 1024),
    )(v_s, v_d, c_s, c_d, psi_b, h_s, h_d)
    return out.T                                           # (S, B)


# ---------------------------------------------------------------------------
# Parameters (mirror ModuleList([Linear(2D, D), Linear(2D, D)]) + psi)
# ---------------------------------------------------------------------------
def init_params(key, embed_dim):
    D = embed_dim
    k0, k1, k2, k3 = jax.random.split(key, 4)
    bound = 1.0 / jnp.sqrt(2.0 * D)     # nn.Linear uniform bound, fan_in = 2D
    W0 = jax.random.uniform(k0, (2 * D, D), jnp.float32, -bound, bound)
    b0 = jax.random.uniform(k1, (D,), jnp.float32, -bound, bound)
    W1 = jax.random.uniform(k2, (2 * D, D), jnp.float32, -bound, bound)
    b1 = jax.random.uniform(k3, (D,), jnp.float32, -bound, bound)
    psi = 0.5 * jnp.ones((2,), jnp.float32)
    return {"W0": W0, "b0": b0, "W1": W1, "b1": b1, "psi": psi}


# ---------------------------------------------------------------------------
# Full Decoder_GHNN.forward
# ---------------------------------------------------------------------------
def decoder_ghnn_forward(params, all_embeddings, h_src, h_dst, h_src_tp,
                         h_dst_tp, assoc, src, pos_dst, et, all_td_tp, *,
                         timestep):
    D = all_embeddings.shape[1]
    B = src.shape[0]
    emb = all_embeddings.astype(jnp.float32)
    W0, b0 = params["W0"], params["b0"]
    W1, b1 = params["W1"], params["b1"]

    z_src = emb[assoc[src]]                        # (B, D)
    z_dst = emb[assoc[pos_dst]]                    # (B, D)
    etk = et > 0                                   # (B,)  same semantics as (et>0).long()
    psi = params["psi"][etk.astype(jnp.int32)]     # (B,)
    inv = 1.0 / (psi + 1e-7)                       # (B,)

    # --- grid-invariant precompute for kernel A (hoisted out of the tile loop)
    def lam_raw(z_u, h):
        zc = jnp.concatenate([z_u, h.astype(jnp.float32)], axis=-1)   # (B, 2D)
        l0 = zc @ W0 + b0
        l1 = zc @ W1 + b1
        return jnp.where(etk[:, None], l1, l0)                        # (B, D)

    lam_src = lam_raw(z_src, h_src)
    lam_dst = lam_raw(z_dst, h_dst)
    lam2 = (jnp.concatenate([lam_src, lam_dst], axis=0)
            * jnp.concatenate([inv, inv])[:, None])                   # (2B, D)
    psi2 = jnp.concatenate([psi, psi])[:, None]                       # (2B, 1)

    lam_node = compute_node_intensities(lam2, psi2, emb)              # (2B, N)
    lambda_src = lam_node[:B].reshape(-1)
    lambda_dst = lam_node[B:].reshape(-1)

    # --- grid-invariant precompute for kernel B
    # (z_u@Wz + h@Wh + b).z_v == h.(z_v@Wh^T) + z_u.(z_v@Wz^T) + b.z_v
    def side(z_u, z_v):
        v0 = z_v @ W0[D:].T
        v1 = z_v @ W1[D:].T
        u0 = z_v @ W0[:D].T
        u1 = z_v @ W1[:D].T
        v = jnp.where(etk[:, None], v1, v0)                           # (B, D)
        c = jnp.sum(z_u * jnp.where(etk[:, None], u1, u0), axis=-1)
        c = c + jnp.where(etk, z_v @ b1, z_v @ b0)                    # (B,)
        return v * inv[:, None], (c * inv)[:, None]

    v_s, c_s = side(z_src, z_dst)   # src side: z_u=z_src, h=h_src_tp, z_v=z_dst
    v_d, c_d = side(z_dst, z_src)   # dst side: z_u=z_dst, h=h_dst_tp, z_v=z_src

    intensity = compute_tp_intensity(v_s, v_d, c_s, c_d, psi[:, None],
                                     h_src_tp, h_dst_tp)              # (S, B)

    # TODO(synk): the tiny (S, B) cumulative-sum + trapezoid integration stays
    # in plain JAX glue (sequential over num_samples, negligible work).
    integral = jnp.cumsum(timestep * intensity, axis=0)
    density = intensity * jnp.exp(-integral)
    t_sample = all_td_tp * density
    return_time_pred = (timestep * 0.5 * (t_sample[:-1] + t_sample[1:])).sum(axis=0)

    return lambda_src, lambda_dst, return_time_pred


# ---------------------------------------------------------------------------
# Pure-JAX reference implementing the literal PyTorch forward (sanity check)
# ---------------------------------------------------------------------------
def _intensity_ref(params, z_u, h, z_v, et_uv):
    etk = (et_uv > 0).astype(jnp.int32)
    zc = jnp.concatenate([z_u, h], axis=-1)
    lam0 = zc @ params["W0"] + params["b0"]
    lam1 = zc @ params["W1"] + params["b1"]
    lam = jnp.where((etk == 1)[:, None], lam1, lam0)
    psi = params["psi"][etk]
    g = jnp.sum(lam * z_v, axis=1)
    g_psi = g / (psi + 1e-7)
    return psi * (jnp.log(1.0 + jnp.exp(-g_psi)) + g_psi)


def _forward_ref(params, all_embeddings, h_src, h_dst, h_src_tp, h_dst_tp,
                 assoc, src, pos_dst, et, all_td_tp, *, timestep):
    N, D = all_embeddings.shape
    B = src.shape[0]
    S = h_src_tp.shape[0]
    z_src = all_embeddings[assoc[src]]
    z_dst = all_embeddings[assoc[pos_dst]]
    rep = lambda x: jnp.broadcast_to(x[:, None, :], (B, N, D)).reshape(B * N, D)
    z_all = jnp.tile(all_embeddings, (B, 1))
    et_rep = jnp.broadcast_to(et[:, None], (B, N)).reshape(B * N)
    lambda_src = _intensity_ref(params, rep(z_src), rep(h_src), z_all, et_rep)
    lambda_dst = _intensity_ref(params, rep(z_dst), rep(h_dst), z_all, et_rep)
    lam_s = _intensity_ref(params, jnp.tile(z_src, (S, 1)),
                           h_src_tp.reshape(-1, D), jnp.tile(z_dst, (S, 1)),
                           jnp.tile(et, (S,))).reshape(S, B)
    lam_d = _intensity_ref(params, jnp.tile(z_dst, (S, 1)),
                           h_dst_tp.reshape(-1, D), jnp.tile(z_src, (S, 1)),
                           jnp.tile(et, (S,))).reshape(S, B)
    intensity = 0.5 * (lam_s + lam_d)
    integral = jnp.cumsum(timestep * intensity, axis=0)
    density = intensity * jnp.exp(-integral)
    t_sample = all_td_tp * density
    return_time_pred = (timestep * 0.5 * (t_sample[:-1] + t_sample[1:])).sum(axis=0)
    return lambda_src, lambda_dst, return_time_pred


if __name__ == "__main__":
    # Keep f32 matmuls exact on both the XLA reference and the Pallas kernels
    # so the (re-associated) kernel math matches the literal reference tightly.
    jax.config.update("jax_default_matmul_precision", "highest")

    D = EMBED_DIM
    N = 300          # num_nodes: exercises a 2-step grid + masked partial tail tile
    B = 4            # batch of events (len(src))  -> 2B = 8 fills the sublanes
    S = 5            # num_samples = h_max / timestep + 1
    timestep = 0.1

    key = jax.random.PRNGKey(0)
    keys = jax.random.split(key, 10)
    params = init_params(keys[0], D)

    all_embeddings = jax.random.normal(keys[1], (N, D), jnp.float32)
    h_src = jax.random.normal(keys[2], (B, D), jnp.float32)
    h_dst = jax.random.normal(keys[3], (B, D), jnp.float32)
    h_src_tp = jax.random.normal(keys[4], (S, B, D), jnp.float32)
    h_dst_tp = jax.random.normal(keys[5], (S, B, D), jnp.float32)
    all_td_tp = jax.random.uniform(keys[6], (S, B), jnp.float32)
    assoc = jnp.arange(N, dtype=jnp.int32)
    src = jax.random.randint(keys[7], (B,), 0, N, dtype=jnp.int32)
    pos_dst = jax.random.randint(keys[8], (B,), 0, N, dtype=jnp.int32)
    et = jax.random.randint(keys[9], (B,), 0, 2, dtype=jnp.int32)

    fwd = jax.jit(decoder_ghnn_forward, static_argnames=("timestep",))
    lambda_src, lambda_dst, return_time_pred = fwd(
        params, all_embeddings, h_src, h_dst, h_src_tp, h_dst_tp,
        assoc, src, pos_dst, et, all_td_tp, timestep=timestep)
    jax.block_until_ready((lambda_src, lambda_dst, return_time_pred))

    assert lambda_src.shape == (B * N,)
    assert lambda_dst.shape == (B * N,)
    assert return_time_pred.shape == (B,)

    ref_src, ref_dst, ref_rt = _forward_ref(
        params, all_embeddings, h_src, h_dst, h_src_tp, h_dst_tp,
        assoc, src, pos_dst, et, all_td_tp, timestep=timestep)

    assert jnp.allclose(lambda_src, ref_src, rtol=2e-3, atol=2e-3), \
        "lambda_src mismatch vs reference"
    assert jnp.allclose(lambda_dst, ref_dst, rtol=2e-3, atol=2e-3), \
        "lambda_dst mismatch vs reference"
    assert jnp.allclose(return_time_pred, ref_rt, rtol=2e-3, atol=2e-3), \
        "return_time_pred mismatch vs reference"

    print("KERNEL_OK")
</pallas_src>

<mosaic_0001>
module attributes {stable_mosaic.version = 11 : i64} {
  func.func @_node_intensity_kernel(%arg0: i32, %arg1: memref<8x32xf32, #tpu.memory_space<vmem>>, %arg2: memref<8x1xf32, #tpu.memory_space<vmem>>, %arg3: memref<256x32xf32, #tpu.memory_space<vmem>>, %arg4: memref<8x256xf32, #tpu.memory_space<vmem>>) attributes {dimension_semantics = [#tpu.dimension_semantics<parallel>], iteration_bounds = array<i64: 2>, scalar_prefetch = 0 : i64, scratch_operands = 0 : i64, tpu.core_type = #tpu.core_type<tc>, window_params = [{pipeline_mode = #tpu.pipeline_mode<synchronous>, transform_indices = @transform_0, window_bounds = array<i64: 8, 32>}, {pipeline_mode = #tpu.pipeline_mode<synchronous>, transform_indices = @transform_1, window_bounds = array<i64: 8, 1>}, {transform_indices = @transform_2, window_bounds = array<i64: 256, 32>}, {transform_indices = @transform_3, window_bounds = array<i64: 8, 256>}]} {
    %c0 = arith.constant 0 : index
    %c0_0 = arith.constant 0 : index
    %0 = vector.load %arg1[%c0, %c0_0] : memref<8x32xf32, #tpu.memory_space<vmem>>, vector<8x32xf32>
    %c0_1 = arith.constant 0 : index
    %c0_2 = arith.constant 0 : index
    %1 = vector.load %arg2[%c0_1, %c0_2] : memref<8x1xf32, #tpu.memory_space<vmem>>, vector<8x1xf32>
    %c0_3 = arith.constant 0 : index
    %c0_4 = arith.constant 0 : index
    %2 = vector.load %arg3[%c0_3, %c0_4] : memref<256x32xf32, #tpu.memory_space<vmem>>, vector<256x32xf32>
    %cst = arith.constant dense<0.000000e+00> : vector<8x256xf32>
    %3 = tpu.matmul %0, %2, %cst {dimension_numbers = #tpu.dot_dimension_numbers<[1], [1], [0], [0], [0, 0, 1, 0], [], []>, precision = #tpu.contract_precision<fp32>} : vector<8x32xf32>, vector<256x32xf32>, vector<8x256xf32> -> vector<8x256xf32>
    %cst_5 = arith.constant 0.000000e+00 : f32
    %4 = vector.broadcast %cst_5 : f32 to vector<8x256xf32>
    %5 = arith.maximumf %3, %4 : vector<8x256xf32>
    %6 = math.absf %3 : vector<8x256xf32>
    %cst_6 = arith.constant 0.000000e+00 : f32
    %7 = vector.broadcast %cst_6 : f32 to vector<8x256xf32>
    %8 = arith.subf %7, %6 : vector<8x256xf32>
    %9 = math.exp %8 : vector<8x256xf32>
    %cst_7 = arith.constant 1.000000e+00 : f32
    %10 = vector.broadcast %cst_7 : f32 to vector<8x256xf32>
    %11 = arith.addf %10, %9 : vector<8x256xf32>
    %12 = math.log %11 : vector<8x256xf32>
    %13 = arith.addf %5, %12 : vector<8x256xf32>
    %14 = vector.broadcast %1 : vector<8x1xf32> to vector<8x256xf32>
    %15 = arith.mulf %14, %13 : vector<8x256xf32>
    %c0_8 = arith.constant 0 : index
    %c0_9 = arith.constant 0 : index
    %16 = vector.load %arg4[%c0_8, %c0_9] : memref<8x256xf32, #tpu.memory_space<vmem>>, vector<8x256xf32>
    tpu.vector_store %arg4[%c0_8, %c0_9], %15 {strides = array<i32>} : memref<8x256xf32, #tpu.memory_space<vmem>>, vector<8x256xf32>,
    return
  }
  func.func @transform_0(%arg0: i32) -> (i32, i32) {
    %c0_i32 = arith.constant 0 : i32
    %c0_i32_0 = arith.constant 0 : i32
    %c0_i32_1 = arith.constant 0 : i32
    return %c0_i32, %c0_i32_0 : i32, i32
  }
  func.func @transform_1(%arg0: i32) -> (i32, i32) {
    %c0_i32 = arith.constant 0 : i32
    %c0_i32_0 = arith.constant 0 : i32
    %c0_i32_1 = arith.constant 0 : i32
    return %c0_i32, %c0_i32_0 : i32, i32
  }
  func.func @transform_2(%arg0: i32) -> (i32, i32) {
    %c0_i32 = arith.constant 0 : i32
    %c0_i32_0 = arith.constant 0 : i32
    return %arg0, %c0_i32 : i32, i32
  }
  func.func @transform_3(%arg0: i32) -> (i32, i32) {
    %c0_i32 = arith.constant 0 : i32
    %c0_i32_0 = arith.constant 0 : i32
    return %c0_i32, %arg0 : i32, i32
  }
}

module attributes {stable_mosaic.version = 11 : i64} {
  func.func @_tp_intensity_kernel(%arg0: i32, %arg1: memref<4x32xf32, #tpu.memory_space<vmem>>, %arg2: memref<4x32xf32, #tpu.memory_space<vmem>>, %arg3: memref<4x1xf32, #tpu.memory_space<vmem>>, %arg4: memref<4x1xf32, #tpu.memory_space<vmem>>, %arg5: memref<4x1xf32, #tpu.memory_space<vmem>>, %arg6: memref<4x32x128xf32, #tpu.memory_space<vmem>>, %arg7: memref<4x32x128xf32, #tpu.memory_space<vmem>>, %arg8: memref<4x128xf32, #tpu.memory_space<vmem>>) attributes {dimension_semantics = [#tpu.dimension_semantics<parallel>], iteration_bounds = array<i64: 1>, scalar_prefetch = 0 : i64, scratch_operands = 0 : i64, tpu.core_type = #tpu.core_type<tc>, window_params = [{pipeline_mode = #tpu.pipeline_mode<synchronous>, transform_indices = @transform_0, window_bounds = array<i64: 4, 32>}, {pipeline_mode = #tpu.pipeline_mode<synchronous>, transform_indices = @transform_1, window_bounds = array<i64: 4, 32>}, {pipeline_mode = #tpu.pipeline_mode<synchronous>, transform_indices = @transform_2, window_bounds = array<i64: 4, 1>}, {pipeline_mode = #tpu.pipeline_mode<synchronous>, transform_indices = @transform_3, window_bounds = array<i64: 4, 1>}, {pipeline_mode = #tpu.pipeline_mode<synchronous>, transform_indices = @transform_4, window_bounds = array<i64: 4, 1>}, {transform_indices = @transform_5, window_bounds = array<i64: 4, 32, 128>}, {transform_indices = @transform_6, window_bounds = array<i64: 4, 32, 128>}, {transform_indices = @transform_7, window_bounds = array<i64: 4, 128>}]} {
    %c0 = arith.constant 0 : index
    %c0_0 = arith.constant 0 : index
    %0 = vector.load %arg1[%c0, %c0_0] : memref<4x32xf32, #tpu.memory_space<vmem>>, vector<4x32xf32>
    %c0_1 = arith.constant 0 : index
    %c0_2 = arith.constant 0 : index
    %1 = vector.load %arg2[%c0_1, %c0_2] : memref<4x32xf32, #tpu.memory_space<vmem>>, vector<4x32xf32>
    %c0_3 = arith.constant 0 : index
    %c0_4 = arith.constant 0 : index
    %2 = vector.load %arg3[%c0_3, %c0_4] : memref<4x1xf32, #tpu.memory_space<vmem>>, vector<4x1xf32>
    %c0_5 = arith.constant 0 : index
    %c0_6 = arith.constant 0 : index
    %3 = vector.load %arg4[%c0_5, %c0_6] : memref<4x1xf32, #tpu.memory_space<vmem>>, vector<4x1xf32>
    %c0_7 = arith.constant 0 : index
    %c0_8 = arith.constant 0 : index
    %4 = vector.load %arg5[%c0_7, %c0_8] : memref<4x1xf32, #tpu.memory_space<vmem>>, vector<4x1xf32>
    %c0_9 = arith.constant 0 : index
    %c0_10 = arith.constant 0 : index
    %c0_11 = arith.constant 0 : index
    %5 = vector.load %arg6[%c0_9, %c0_10, %c0_11] : memref<4x32x128xf32, #tpu.memory_space<vmem>>, vector<4x32x128xf32>
    %c0_12 = arith.constant 0 : index
    %c0_13 = arith.constant 0 : index
    %c0_14 = arith.constant 0 : index
    %6 = vector.load %arg7[%c0_12, %c0_13, %c0_14] : memref<4x32x128xf32, #tpu.memory_space<vmem>>, vector<4x32x128xf32>
    %7 = vector.shape_cast %0 : vector<4x32xf32> to vector<4x32x1xf32>
    %8 = vector.broadcast %7 : vector<4x32x1xf32> to vector<4x32x128xf32>
    %9 = arith.mulf %5, %8 : vector<4x32x128xf32>
    %cst = arith.constant dense<0.000000e+00> : vector<4x128xf32>
    %10 = vector.multi_reduction <add>, %9, %cst [1] : vector<4x32x128xf32> to vector<4x128xf32>
    %11 = vector.broadcast %2 : vector<4x1xf32> to vector<4x128xf32>
    %12 = arith.addf %10, %11 : vector<4x128xf32>
    %13 = vector.shape_cast %1 : vector<4x32xf32> to vector<4x32x1xf32>
    %14 = vector.broadcast %13 : vector<4x32x1xf32> to vector<4x32x128xf32>
    %15 = arith.mulf %6, %14 : vector<4x32x128xf32>
    %cst_15 = arith.constant dense<0.000000e+00> : vector<4x128xf32>
    %16 = vector.multi_reduction <add>, %15, %cst_15 [1] : vector<4x32x128xf32> to vector<4x128xf32>
    %17 = vector.broadcast %3 : vector<4x1xf32> to vector<4x128xf32>
    %18 = arith.addf %16, %17 : vector<4x128xf32>
    %cst_16 = arith.constant 5.000000e-01 : f32
    %19 = vector.broadcast %cst_16 : f32 to vector<4x1xf32>
    %20 = arith.mulf %19, %4 : vector<4x1xf32>
    %cst_17 = arith.constant 0.000000e+00 : f32
    %21 = vector.broadcast %cst_17 : f32 to vector<4x128xf32>
    %22 = arith.maximumf %12, %21 : vector<4x128xf32>
    %23 = math.absf %12 : vector<4x128xf32>
    %cst_18 = arith.constant 0.000000e+00 : f32
    %24 = vector.broadcast %cst_18 : f32 to vector<4x128xf32>
    %25 = arith.subf %24, %23 : vector<4x128xf32>
    %26 = math.exp %25 : vector<4x128xf32>
    %cst_19 = arith.constant 1.000000e+00 : f32
    %27 = vector.broadcast %cst_19 : f32 to vector<4x128xf32>
    %28 = arith.addf %27, %26 : vector<4x128xf32>
    %29 = math.log %28 : vector<4x128xf32>
    %30 = arith.addf %22, %29 : vector<4x128xf32>
    %cst_20 = arith.constant 0.000000e+00 : f32
    %31 = vector.broadcast %cst_20 : f32 to vector<4x128xf32>
    %32 = arith.maximumf %18, %31 : vector<4x128xf32>
    %33 = math.absf %18 : vector<4x128xf32>
    %cst_21 = arith.constant 0.000000e+00 : f32
    %34 = vector.broadcast %cst_21 : f32 to vector<4x128xf32>
    %35 = arith.subf %34, %33 : vector<4x128xf32>
    %36 = math.exp %35 : vector<4x128xf32>
    %cst_22 = arith.constant 1.000000e+00 : f32
    %37 = vector.broadcast %cst_22 : f32 to vector<4x128xf32>
    %38 = arith.addf %37, %36 : vector<4x128xf32>
    %39 = math.log %38 : vector<4x128xf32>
    %40 = arith.addf %32, %39 : vector<4x128xf32>
    %41 = arith.addf %30, %40 : vector<4x128xf32>
    %42 = vector.broadcast %20 : vector<4x1xf32> to vector<4x128xf32>
    %43 = arith.mulf %42, %41 : vector<4x128xf32>
    %c0_23 = arith.constant 0 : index
    %c0_24 = arith.constant 0 : index
    %44 = vector.load %arg8[%c0_23, %c0_24] : memref<4x128xf32, #tpu.memory_space<vmem>>, vector<4x128xf32>
    tpu.vector_store %arg8[%c0_23, %c0_24], %43 {strides = array<i32>} : memref<4x128xf32, #tpu.memory_space<vmem>>, vector<4x128xf32>,
    return
  }
  func.func @transform_0(%arg0: i32) -> (i32, i32) {
    %c0_i32 = arith.constant 0 : i32
    %c0_i32_0 = arith.constant 0 : i32
    %c0_i32_1 = arith.constant 0 : i32
    return %c0_i32, %c0_i32_0 : i32, i32
  }
  func.func @transform_1(%arg0: i32) -> (i32, i32) {
    %c0_i32 = arith.constant 0 : i32
    %c0_i32_0 = arith.constant 0 : i32
    %c0_i32_1 = arith.constant 0 : i32
    return %c0_i32, %c0_i32_0 : i32, i32
  }
  func.func @transform_2(%arg0: i32) -> (i32, i32) {
    %c0_i32 = arith.constant 0 : i32
    %c0_i32_0 = arith.constant 0 : i32
    %c0_i32_1 = arith.constant 0 : i32
    return %c0_i32, %c0_i32_0 : i32, i32
  }
  func.func @transform_3(%arg0: i32) -> (i32, i32) {
    %c0_i32 = arith.constant 0 : i32
    %c0_i32_0 = arith.constant 0 : i32
    %c0_i32_1 = arith.constant 0 : i32
    return %c0_i32, %c0_i32_0 : i32, i32
  }
  func.func @transform_4(%arg0: i32) -> (i32, i32) {
    %c0_i32 = arith.constant 0 : i32
    %c0_i32_0 = arith.constant 0 : i32
    %c0_i32_1 = arith.constant 0 : i32
    return %c0_i32, %c0_i32_0 : i32, i32
  }
  func.func @transform_5(%arg0: i32) -> (i32, i32, i32) {
    %c0_i32 = arith.constant 0 : i32
    %c0_i32_0 = arith.constant 0 : i32
    %c0_i32_1 = arith.constant 0 : i32
    return %c0_i32, %c0_i32_0, %arg0 : i32, i32, i32
  }
  func.func @transform_6(%arg0: i32) -> (i32, i32, i32) {
    %c0_i32 = arith.constant 0 : i32
    %c0_i32_0 = arith.constant 0 : i32
    %c0_i32_1 = arith.constant 0 : i32
    return %c0_i32, %c0_i32_0, %arg0 : i32, i32, i32
  }
  func.func @transform_7(%arg0: i32) -> (i32, i32) {
    %c0_i32 = arith.constant 0 : i32
    %c0_i32_0 = arith.constant 0 : i32
    return %c0_i32, %arg0 : i32, i32
  }
}

</mosaic_0001>

<bundles_post_ra>
// kernel: decoder_ghnn_forward.3
= control target key start
LH: loop header
LB: loop body
LE: loop exit
PB: predicated region body
PF: predicated region fallthrough
CT: control target
= control target key end

     0   :  { %v64_v0 = vlaneseq  ;;  %v562_v14 = vmov 0   ;;  %vm484_vm0 = vcmask 1041409   ;;  %vm487_vm1 = vcmask 1042434   ;;  %s828_s0 = inlined_call_operand.vmem [shape: f32[4,32], index: 0, kind: input, shape index: {}]   ;;  %s829_s1 = inlined_call_operand.vmem [shape: f32[4,32], index: 1, kind: input, shape index: {}]   ;;  %s830_s2 = inlined_call_operand.vmem [shape: f32[4,1], index: 2, kind: input, shape index: {}]   ;;  %s831_s5 = inlined_call_operand.vmem [shape: f32[4,32,5], index: 5, kind: input, shape index: {}]   ;;  %s832_s3 = inlined_call_operand.vmem [shape: f32[4,1], index: 3, kind: input, shape index: {}]   ;;  %s833_s4 = inlined_call_operand.vmem [shape: f32[4,1], index: 4, kind: input, shape index: {}]   ;;  %s834_s6 = inlined_call_operand.vmem [shape: f32[4,32,5], index: 6, kind: input, shape index: {}]   ;;  %s835_s7 = inlined_call_operand.vmem [shape: f32[4,5], index: 7, kind: output, shape index: {}]  }
   0x1   :  { %v26_v4 = vld [vmem:[%s828_s0] sm:$0xf]  ;;  %v36_v18 = vld [vmem:[%s831_s5 + $0x28] sm:$0xff]  ;;  %v37_v30 = vld [vmem:[%s831_s5 + $0x30] sm:$0xff]  ;;  %vm490_vm2 = vcmask 1043459  }
   0x2   :  { %v603_v1 = vshrl.u32 %v64_v0, 7  ;;  %v88_v5 = vperm.slane %v26_v4, 1  ;;  %v63_v6 = vperm.slane %v26_v4, 0  ;;  %v138_v8 = vperm.slane %v26_v4, 3  ;;  %v27_v9 = vld [vmem:[%s829_s1] sm:$0xf] }
   0x3   :  { %v625_v10 = vperm.slane %v27_v9, 0  ;;  %v113_v11 = vperm.slane %v26_v4, 2  ;;  %v637_v12 = vperm.slane %v27_v9, 2  ;;  %v28_v13 = vld [vmem:[%s830_s2] sm:$0xf]  ;;  %v255_v17 = vperm.slane %v27_v9, 1 }
   0x4   :  { %501 = vset.pattern.permute.xlu2 %v603_v1  ;;  %v607_v2 = vadd.s32 16, %v603_v1  ;;  %v610_v3 = vadd.s32 8, %v603_v1  ;;  %v618_v7 = vadd.s32 24, %v603_v1  ;;  %v35_v16 = vld [vmem:[%s831_s5 + $0x20] sm:$0xff]  ;;  %v305_v26 = vperm.slane %v27_v9, 3  ;;  %v32_v29 = vld [vmem:[%s831_s5 + $0x8] sm:$0xff] }
   0x5   :  { %v31_v31 = vld [vmem:[%s831_s5] sm:$0xff]  ;;  %v38_v32 = vld [vmem:[%s831_s5 + $0x38] sm:$0xff]  ;;  %v33_v35 = vld [vmem:[%s831_s5 + $0x10] sm:$0xff] }
   0x6   :  { %502 = vset.pattern.permute.xlu1 %v607_v2  ;;  %500 = vset.pattern.permute.xlu0 %v610_v3  ;;  %v34_v41 = vld [vmem:[%s831_s5 + $0x18] sm:$0xff]  ;;  %v29_v49 = vld [vmem:[%s832_s3] sm:$0xf]  ;;  %v40_v4 = vld [vmem:[%s831_s5 + $0x48] sm:$0xff] }
   0x7   :  { %v30_v57 = vld [vmem:[%s833_s4] sm:$0xf] }
   0x8   :  { %v397_v58 = vmul.f32 0.5, %v30_v57  ;;  %v58_v57 = vld [vmem:[%s834_s6 + $0x58] sm:$0xff] }
   0xc   :  { %93 = vperm.xlu2 %501, %v88_v5  }
   0xe   :  { %80 = vperm.xlu1 %502, %v63_v6   ;;  %74 = vperm.xlu0 %500, %v63_v6  }
  0x14   :  { %504 = vset.pattern.permute.xlu2 %v610_v3 }
  0x16   :  { %503 = vset.pattern.permute.xlu1 %v618_v7  ;;  %149 = vperm.xlu0 %500, %v138_v8  }
  0x1c   :  { %99 = vperm.xlu2 %504, %v88_v5  }
  0x1e   :  { %86 = vperm.xlu1 %503, %v63_v6   ;;  %241 = vperm.xlu0 %500, %v625_v10  }
  0x24   :  { %506 = vset.pattern.permute.xlu2 %v618_v7 }
  0x26   :  { %505 = vset.pattern.permute.xlu1 %v607_v2  ;;  %515 = vset.pattern.permute.xlu0 %v603_v1 }
  0x2c   :  { %111 = vperm.xlu2 %506, %v88_v5  }
  0x2e   :  { %105 = vperm.xlu1 %505, %v88_v5   ;;  %68 = vperm.xlu0 %515, %v63_v6   ;;  %v39_v5 = vld [vmem:[%s831_s5 + $0x40] sm:$0xff] }
  0x34   :  { %508 = vset.pattern.permute.xlu2 %v607_v2 }
  0x36   :  { %507 = vset.pattern.permute.xlu1 %v610_v3  ;;  %118 = vperm.xlu0 %515, %v113_v11  }
  0x3c   :  { %130 = vperm.xlu2 %508, %v113_v11  }
  0x3e   :  { %124 = vperm.xlu1 %507, %v113_v11   ;;  %285 = vperm.xlu0 %515, %v637_v12  }
  0x44   :  { %510 = vset.pattern.permute.xlu2 %v603_v1 }
  0x46   :  { %509 = vset.pattern.permute.xlu1 %v618_v7  ;;  %522 = vset.pattern.permute.xlu0 %v607_v2 }
  0x4c   :  { %143 = vperm.xlu2 %510, %v138_v8  }
  0x4e   :  { %136 = vperm.xlu1 %509, %v113_v11   ;;  %297 = vperm.xlu0 %522, %v637_v12   ;;  %v42_v11 = vld [vmem:[%s831_s5 + $0x58] sm:$0xff] }
  0x54   :  { %512 = vset.pattern.permute.xlu2 %v618_v7 }
  0x56   :  { %511 = vset.pattern.permute.xlu1 %v607_v2  ;;  %525 = vset.pattern.permute.xlu0 %v618_v7 }
  0x5c   :  { %161 = vperm.xlu2 %512, %v138_v8  }
  0x5e   :  { %155 = vperm.xlu1 %511, %v138_v8   ;;  %253 = vperm.xlu0 %525, %v625_v10  }
  0x64   :  { %514 = vset.pattern.permute.xlu2 %v603_v1 }
  0x66   :  { %513 = vset.pattern.permute.xlu1 %v562_v14  ;;  %v94_v15 = vpop.permute.xlu2 %93  ;;  %529 = vset.pattern.permute.xlu0 %v562_v14 }
  0x67   :  { %217 = vperm.xlu1 %513, %v28_v13   ;;  %v167_v19 = vmul.f32 %v94_v15, %v35_v16  ;;  %v52_v16 = vld [vmem:[%s834_s6 + $0x28] sm:$0xff] }
  0x6c   :  { %235 = vperm.xlu2 %514, %v625_v10  }
  0x6f   :  { %516 = vset.pattern.permute.xlu1 %v603_v1 }
  0x74   :  { %517 = vset.pattern.permute.xlu2 %v610_v3 }
  0x76   :  { %v100_v20 = vpop.permute.xlu2 %99 }
  0x77   :  { %260 = vperm.xlu1 %516, %v255_v17   ;;  %v168_v21 = vmul.f32 %v100_v20, %v36_v18 }
  0x79   :  { %v188_v22 = vadd.f32 %v168_v21, %v167_v19 }
  0x7c   :  { %266 = vperm.xlu2 %517, %v255_v17  }
  0x7f   :  { %518 = vset.pattern.permute.xlu1 %v610_v3 }
  0x80   :  { %v75_v23 = vpop.permute.xlu0 %74  ;;  %v81_v25 = vpop.permute.xlu1 %80 }
  0x81   :  { %v164_v34 = vmul.f32 %v75_v23, %v32_v29  ;;  %v165_v42 = vmul.f32 %v81_v25, %v33_v35  ;;  %v54_v35 = vld [vmem:[%s834_s6 + $0x38] sm:$0xff] }
  0x84   :  { %519 = vset.pattern.permute.xlu2 %v607_v2 }
  0x86   :  { %v112_v33 = vpop.permute.xlu2 %111 }
  0x87   :  { %291 = vperm.xlu1 %518, %v637_v12   ;;  %v170_v40 = vmul.f32 %v112_v33, %v38_v32  ;;  %v55_v32 = vld [vmem:[%s834_s6 + $0x40] sm:$0xff]  ;;  %v56_v33 = vld [vmem:[%s834_s6 + $0x48] sm:$0xff] }
  0x88   :  { %v662_v24 = vpop.permute.xlu0 %149 }
  0x8c   :  { %272 = vperm.xlu2 %519, %v255_v17  }
  0x8f   :  { %520 = vset.pattern.permute.xlu1 %v603_v1 }
  0x90   :  { %v666_v27 = vpop.permute.xlu0 %241  ;;  %v87_v28 = vpop.permute.xlu1 %86 }
  0x91   :  { %v166_v45 = vmul.f32 %v87_v28, %v34_v41 }
  0x94   :  { %521 = vset.pattern.permute.xlu2 %v610_v3 }
  0x96   :  { %v131_v52 = vpop.permute.xlu2 %130 }
  0x97   :  { %310 = vperm.xlu1 %520, %v305_v26  }
  0x9c   :  { %316 = vperm.xlu2 %521, %v305_v26  }
  0x9f   :  { %523 = vset.pattern.permute.xlu1 %v607_v2 }
  0xa0   :  { %v106_v36 = vpop.permute.xlu1 %105  ;;  %v69_v37 = vpop.permute.xlu0 %68 }
  0xa1   :  { %v169_v38 = vmul.f32 %v106_v36, %v37_v30  ;;  %v163_v39 = vmul.f32 %v69_v37, %v31_v31 }
  0xa3   :  { %v189_v43 = vadd.f32 %v188_v22, %v169_v38  ;;  %v179_v44 = vadd.f32 %v164_v34, %v163_v39  ;;  %v44_v38 = vld [vmem:[%s831_s5 + $0x68] sm:$0xff] }
  0xa4   :  { %524 = vset.pattern.permute.xlu2 %v618_v7 }
  0xa5   :  { %v180_v46 = vadd.f32 %v179_v44, %v165_v42  ;;  %v190_v47 = vadd.f32 %v189_v43, %v170_v40  ;;  %v43_v44 = vld [vmem:[%s831_s5 + $0x60] sm:$0xff] }
  0xa6   :  { %v144_v56 = vpop.permute.xlu2 %143 }
  0xa7   :  { %v181_v48 = vadd.f32 %v180_v46, %v166_v45  ;;  %247 = vperm.xlu1 %523, %v625_v10   ;;  %v41_v10 = vld [vmem:[%s831_s5 + $0x50] sm:$0xff]  ;;  %v191_v25 = vrot.slane %v190_v47, 4 }
  0xa8   :  { %v119_v6 = vpop.permute.xlu0 %118  ;;  %v173_v13 = vmul.f32 %v131_v52, %v41_v10  ;;  %v57_v45 = vld [vmem:[%s834_s6 + $0x50] sm:$0xff] }
  0xa9   :  { %v182_v51 = vrot.slane %v181_v48, 4  ;;  %v171_v8 = vmul.f32 %v119_v6, %v39_v5  ;;  %v192_v31 = vadd.f32 %v191_v25, %v190_v47 }
  0xab   :  { %v183_v53 = vadd.f32 %v182_v51, %v181_v48  ;;  %v193_v43 = vrot.slane %v192_v31, 2  ;;  %v176_v48 = vmul.f32 %v662_v24, %v44_v38  ;;  %v175_v51 = vmul.f32 %v144_v56, %v43_v44  ;;  %v46_v24 = vld [vmem:[%s831_s5 + $0x78] sm:$0xff] }
  0xac   :  { %278 = vperm.xlu2 %524, %v255_v17   ;;  %v51_v17 = vld [vmem:[%s834_s6 + $0x20] sm:$0xff] }
  0xad   :  { %v184_v55 = vrot.slane %v183_v53, 2 }
  0xaf   :  { %322 = vperm.xlu1 %523, %v305_v26   ;;  %v185_v60 = vadd.f32 %v184_v55, %v183_v53  ;;  %v194_v55 = vadd.f32 %v193_v43, %v192_v31 }
  0xb0   :  { %v125_v50 = vpop.permute.xlu1 %124  ;;  %v286_v21 = vpop.permute.xlu0 %285 }
  0xb1   :  { %v186_v61 = vrot.slane %v185_v60, 1  ;;  %v338_v40 = vmul.f32 %v286_v21, %v55_v32  ;;  %v195_v6 = vrot.slane %v194_v55, 1 }
  0xb3   :  { %v187_v63 = vadd.f32 %v186_v61, %v185_v60 }
  0xb4   :  { %303 = vperm.xlu2 %524, %v637_v12  }
  0xb6   :  { %v699_v62 = vpop.permute.xlu2 %161 }
  0xb7   :  { %526 = vset.pattern.permute.xlu1 %v618_v7  ;;  %v172_v7 = vmul.f32 %v125_v50, %v40_v4  ;;  %v45_v50 = vld [vmem:[%s831_s5 + $0x70] sm:$0xff] }
  0xb9   :  { %v197_v12 = vadd.f32 %v172_v7, %v171_v8  ;;  %v178_v8 = vmul.f32 %v699_v62, %v46_v24 }
  0xbb   :  { %v198_v15 = vadd.f32 %v197_v12, %v173_v13 }
  0xbc   :  { %527 = vset.pattern.permute.xlu2 %v562_v14 }
  0xbd   :  { %384 = vperm.xlu2 %527, %v29_v49  }
  0xbf   :  { %328 = vperm.xlu1 %526, %v305_v26   ;;  %v53_v26 = vld [vmem:[%s834_s6 + $0x30] sm:$0xff] }
  0xc0   :  { %v137_v54 = vpop.permute.xlu1 %136  ;;  %v298_v46 = vpop.permute.xlu0 %297 }
  0xc1   :  { %v340_v53 = vmul.f32 %v298_v46, %v57_v45 }
  0xc6   :  { %v706_v2 = vpop.permute.xlu2 %235 }
  0xc7   :  { %528 = vset.pattern.permute.xlu1 %v562_v14  ;;  %v174_v14 = vmul.f32 %v137_v54, %v42_v11 }
  0xc8   :  { %476 = vperm.xlu1 %528, %v397_v58  }
  0xc9   :  { %v199_v20 = vadd.f32 %v198_v15, %v174_v14  ;;  %v47_v14 = vld [vmem:[%s834_s6] sm:$0xff] }
  0xca   :  { %v330_v21 = vmul.f32 %v706_v2, %v47_v14 }
  0xcb   :  { %v200_v28 = vrot.slane %v199_v20, 4 }
  0xcd   :  { %v201_v36 = vadd.f32 %v200_v28, %v199_v20 }
  0xcf   :  { %v202_v49 = vrot.slane %v201_v36, 2 }
  0xd0   :  { %v156_v59 = vpop.permute.xlu1 %155  ;;  %v254_v31 = vpop.permute.xlu0 %253 }
  0xd1   :  { %v177_v58 = vmul.f32 %v156_v59, %v45_v50  ;;  %v203_v61 = vadd.f32 %v202_v49, %v201_v36  ;;  %v48_v59 = vld [vmem:[%s834_s6 + $0x8] sm:$0xff] }
  0xd3   :  { %v204_v12 = vrot.slane %v203_v61, 1 }
  0xd6   :  { %v267_v3 = vpop.permute.xlu2 %266 }
  0xd7   :  { %v335_v22 = vmul.f32 %v267_v3, %v52_v16  ;;  %v206_v3 = vadd.f32 %v176_v48, %v175_v51  ;;  %v196_v16 = vadd.f32 %v195_v6, %v194_v55 }
  0xd9   :  { %v701_v0 = vpop.permute.xlu1 %217  ;;  %v207_v7 = vadd.f32 %v206_v3, %v177_v58 }
  0xda   :  { %v704_v1 = vadd.f32 %v701_v0, %v187_v63  ;;  %v219_v13 = vrot.slane %v701_v0, 1 }
  0xdb   :  { %v208_v20 = vadd.f32 %v207_v7, %v178_v8 }
  0xdc   :  { %v772_v25 = vadd.f32 %v219_v13, %v196_v16 }
  0xe6   :  { %v273_v9 = vpop.permute.xlu2 %272 }
  0xe7   :  { %v336_v30 = vmul.f32 %v273_v9, %v53_v26 }
  0xe9   :  { %v261_v18 = vpop.permute.xlu1 %260 }
  0xea   :  { %v334_v23 = vmul.f32 %v261_v18, %v51_v17  ;;  %v220_v17 = vrot.slane %v701_v0, 2  ;;  %v331_v18 = vmul.f32 %v666_v27, %v48_v59  ;;  %v59_v59 = vld [vmem:[%s834_s6 + $0x60] sm:$0xff] }
  0xec   :  { %v355_v29 = vadd.f32 %v335_v22, %v334_v23  ;;  %v205_v23 = vadd.f32 %v204_v12, %v203_v61 }
  0xee   :  { %v356_v39 = vadd.f32 %v355_v29, %v336_v30  ;;  %v49_v29 = vld [vmem:[%s834_s6 + $0x10] sm:$0xff]  ;;  %v50_v30 = vld [vmem:[%s834_s6 + $0x18] sm:$0xff]  ;;  %v782_v27 = vadd.f32 %v220_v17, %v205_v23 }
  0xf0   :  { %v404_v43 = vand.u32 2147483647, %v782_v27 }
  0xf6   :  { %v726_v19 = vpop.permute.xlu2 %316 }
  0xf9   :  { %v292_v34 = vpop.permute.xlu1 %291 }
  0xfa   :  { %v339_v41 = vmul.f32 %v292_v34, %v56_v33  ;;  %v209_v33 = vrot.slane %v208_v20, 4  ;;  %v346_v34 = vadd.f32 %v331_v18, %v330_v21 }
  0xfc   :  { %v364_v52 = vadd.f32 %v339_v41, %v338_v40  ;;  %v333_v40 = vmul.f32 %v254_v31, %v50_v30  ;;  %v210_v46 = vadd.f32 %v209_v33, %v208_v20  ;;  %v221_v30 = vrot.slane %v701_v0, 3 }
  0xfe   :  { %v365_v4 = vadd.f32 %v364_v52, %v340_v53  ;;  %v402_v52 = vand.u32 2147483647, %v704_v1  ;;  %v408_v53 = vsub.f32 0.0, %v404_v43  ;;  %v211_v55 = vrot.slane %v210_v46, 2 }
 0x100   :  { %v414_v3 = vmul.f32 1.442695, %v408_v53 }
 0x106   :  { %v279_v37 = vpop.permute.xlu2 %278 }
 0x107   :  { %v337_v42 = vmul.f32 %v279_v37, %v54_v35  ;;  %v403_v37 = vand.u32 2147483647, %v772_v25 }
 0x109   :  { %v357_v47 = vadd.f32 %v356_v39, %v337_v42  ;;  %v760_v10 = vpop.permute.xlu1 %310  ;;  %v407_v48 = vsub.f32 0.0, %v403_v37 }
 0x10b   :  { %v358_v54 = vrot.slane %v357_v47, 4 }
 0x10d   :  { %v359_v60 = vadd.f32 %v358_v54, %v357_v47 }
 0x10e   :  { %v304_v63 = vpop.permute.xlu2 %303 }
 0x10f   :  { %v360_v5 = vrot.slane %v359_v60, 2  ;;  %v341_v56 = vmul.f32 %v304_v63, %v58_v57  ;;  %v406_v63 = vsub.f32 0.0, %v402_v52 }
 0x111   :  { %v361_v9 = vadd.f32 %v360_v5, %v359_v60  ;;  %v366_v11 = vadd.f32 %v365_v4, %v341_v56  ;;  %v412_v60 = vmul.f32 1.442695, %v407_v48  ;;  %v212_v5 = vadd.f32 %v211_v55, %v210_v46 }
 0x112   :  { %v410_v7 = vmul.f32 1.442695, %v406_v63 }
 0x113   :  { %v367_v15 = vrot.slane %v366_v11, 4  ;;  %v362_v62 = vrot.slane %v361_v9, 1 }
 0x115   :  { %v368_v22 = vadd.f32 %v367_v15, %v366_v11  ;;  %v363_v32 = vadd.f32 %v362_v62, %v361_v9  ;;  %v213_v9 = vrot.slane %v212_v5, 1  ;;  %v60_v11 = vld [vmem:[%s834_s6 + $0x68] sm:$0xff]  ;;  %v61_v15 = vld [vmem:[%s834_s6 + $0x70] sm:$0xff]  ;;  %v342_v62 = vmul.f32 %v760_v10, %v59_v59 }
 0x116   :  { %v343_v17 = vmul.f32 %v726_v19, %v60_v11 }
 0x117   :  { %v369_v26 = vrot.slane %v368_v22, 2  ;;  %v774_v28 = vpop.permute.xlu2 %384  ;;  %v214_v21 = vadd.f32 %v213_v9, %v212_v5  ;;  %v399_v5 = vmax.f32 %v772_v25, 0.0 }
 0x118   :  { %v386_v2 = vrot.slane %v774_v28, 1  ;;  %v387_v42 = vrot.slane %v774_v28, 2  ;;  %v373_v19 = vadd.f32 %v343_v17, %v342_v62 }
 0x119   :  { %v370_v35 = vadd.f32 %v369_v26, %v368_v22  ;;  %v248_v36 = vpop.permute.xlu1 %247  ;;  %v814_v10 = vadd.f32 %v221_v30, %v214_v21 }
 0x11a   :  { %v786_v38 = vadd.f32 %v386_v2, %v363_v32  ;;  %v332_v39 = vmul.f32 %v248_v36, %v49_v29  ;;  %v62_v32 = vld [vmem:[%s834_s6 + $0x78] sm:$0xff] }
 0x11b   :  { %v371_v41 = vrot.slane %v370_v35, 1 }
 0x11c   :  { %v439_v44 = vand.u32 2147483647, %v786_v38  ;;  %v347_v45 = vadd.f32 %v346_v34, %v332_v39 }
 0x11d   :  { %v372_v47 = vadd.f32 %v371_v41, %v370_v35 }
 0x11e   :  { %v443_v49 = vsub.f32 0.0, %v439_v44  ;;  %v348_v50 = vadd.f32 %v347_v45, %v333_v40 }
 0x11f   :  { %v791_v51 = vadd.f32 %v387_v42, %v372_v47  ;;  %v405_v42 = vand.u32 2147483647, %v814_v10 }
 0x120   :  { %v349_v54 = vrot.slane %v348_v50, 4  ;;  %v448_v58 = vmul.f32 1.442695, %v443_v49 }
 0x121   :  { %v440_v57 = vand.u32 2147483647, %v791_v51  ;;  %v323_v12 = vpop.permute.xlu1 %322  ;;  %v409_v48 = vsub.f32 0.0, %v405_v42 }
 0x122   :  { %v350_v61 = vadd.f32 %v349_v54, %v348_v50  ;;  %530 = vpow2.f32 %v448_v58  ;;  %v344_v29 = vmul.f32 %v323_v12, %v61_v15 }
 0x123   :  { %v444_v24 = vsub.f32 0.0, %v440_v57  ;;  %532 = vpow2.f32 %v412_v60  ;;  %v416_v58 = vmul.f32 1.442695, %v409_v48 }
 0x124   :  { %v351_v4 = vrot.slane %v350_v61, 2  ;;  %v374_v39 = vadd.f32 %v373_v19, %v344_v29 }
 0x125   :  { %v450_v56 = vmul.f32 1.442695, %v444_v24 }
 0x126   :  { %v352_v6 = vadd.f32 %v351_v4, %v350_v61  ;;  %v435_v61 = vmax.f32 %v786_v38, 0.0  ;;  %v398_v38 = vmax.f32 %v704_v1, 0.0 }
 0x127   :  { %534 = vpow2.f32 %v450_v56  ;;  %v388_v56 = vrot.slane %v774_v28, 3 }
 0x128   :  { %536 = vpow2.f32 %v414_v3  ;;  %v353_v8 = vrot.slane %v352_v6, 1  ;;  %v531_v14 = vpop.eup %530  ;;  %v436_v3 = vmax.f32 %v791_v51, 0.0 }
 0x129   :  { %v533_v16 = vpop.eup %532  ;;  %538 = vpow2.f32 %v410_v7  ;;  %v455_v23 = vadd.f32 1.0, %v531_v14 }
 0x12a   :  { %v354_v13 = vadd.f32 %v353_v8, %v352_v6  ;;  %v419_v33 = vadd.f32 1.0, %v533_v16  ;;  %v400_v8 = vmax.f32 %v782_v27, 0.0 }
 0x12b   :  { %540 = vlog2.f32 %v455_v23 }
 0x12c   :  { %v807_v18 = vadd.f32 %v774_v28, %v354_v13 }
 0x12d   :  { %v535_v20 = vpop.eup %534 }
 0x12e   :  { %v537_v22 = vpop.eup %536  ;;  %v438_v26 = vand.u32 2147483647, %v807_v18  ;;  %v456_v31 = vadd.f32 1.0, %v535_v20  ;;  %v434_v51 = vmax.f32 %v807_v18, 0.0 }
 0x12f   :  { %v420_v34 = vadd.f32 1.0, %v537_v22  ;;  %v539_v36 = vpop.eup %538 }
 0x130   :  { %v442_v2 = vsub.f32 0.0, %v438_v26  ;;  %542 = vlog2.f32 %v456_v31  ;;  %v418_v41 = vadd.f32 1.0, %v539_v36 }
 0x131   :  { %v329_v35 = vpop.permute.xlu1 %328  ;;  %v541_v44 = vpop.eup %540 }
 0x132   :  { %v446_v37 = vmul.f32 1.442695, %v442_v2  ;;  %v345_v40 = vmul.f32 %v329_v35, %v62_v32  ;;  %v461_v54 = vmul.f32 0.6931472, %v541_v44 }
 0x134   :  { %544 = vpow2.f32 %v446_v37  ;;  %v375_v0 = vadd.f32 %v374_v39, %v345_v40  ;;  %v467_v6 = vadd.f32 %v461_v54, %v435_v61 }
 0x135   :  { %546 = vlog2.f32 %v419_v33  ;;  %v401_v33 = vmax.f32 %v814_v10, 0.0 }
 0x136   :  { %548 = vlog2.f32 %v420_v34  ;;  %v376_v43 = vrot.slane %v375_v0, 4  ;;  %v543_v46 = vpop.eup %542 }
 0x137   :  { %550 = vlog2.f32 %v418_v41  ;;  %v463_v57 = vmul.f32 0.6931472, %v543_v46 }
 0x138   :  { %v377_v45 = vadd.f32 %v376_v43, %v375_v0 }
 0x139   :  { %v468_v9 = vadd.f32 %v463_v57, %v436_v3 }
 0x13a   :  { %v545_v47 = vpop.eup %544  ;;  %v378_v49 = vrot.slane %v377_v45, 2  ;;  %v477_v40 = vpop.permute.xlu1 %476 }
 0x13b   :  { %v547_v50 = vpop.eup %546  ;;  %v454_v52 = vadd.f32 1.0, %v545_v47 }
 0x13c   :  { %v549_v53 = vpop.eup %548  ;;  %v379_v55 = vadd.f32 %v378_v49, %v377_v45  ;;  %v425_v60 = vmul.f32 0.6931472, %v547_v50 }
 0x13d   :  { %552 = vlog2.f32 %v454_v52  ;;  %v551_v63 = vpop.eup %550  ;;  %v427_v4 = vmul.f32 0.6931472, %v549_v53 }
 0x13e   :  { %v380_v24 = vrot.slane %v379_v55, 1  ;;  %554 = vpow2.f32 %v416_v58  ;;  %v423_v11 = vmul.f32 0.6931472, %v551_v63  ;;  %v431_v59 = vadd.f32 %v425_v60, %v399_v5 }
 0x13f   :  { %v432_v14 = vadd.f32 %v427_v4, %v400_v8 }
 0x140   :  { %v381_v7 = vadd.f32 %v380_v24, %v379_v55  ;;  %v471_v16 = vadd.f32 %v467_v6, %v431_v59  ;;  %v430_v28 = vadd.f32 %v423_v11, %v398_v38 }
 0x141   :  { %v472_v17 = vadd.f32 %v468_v9, %v432_v14 }
 0x142   :  { %v396_v12 = vadd.f32 %v388_v56, %v381_v7  ;;  %v483_v22 = vrot.slane %v471_v16, 7 }
 0x143   :  { %v553_v13 = vpop.eup %552  ;;  %v486_v26 = vrot.slane %v472_v17, 6 }
 0x144   :  { %v441_v15 = vand.u32 2147483647, %v396_v12  ;;  %v459_v25 = vmul.f32 0.6931472, %v553_v13  ;;  %v555_v27 = vpop.eup %554  ;;  %v437_v34 = vmax.f32 %v396_v12, 0.0 }
 0x145   :  { %v421_v1 = vadd.f32 1.0, %v555_v27 }
 0x146   :  { %v445_v62 = vsub.f32 0.0, %v441_v15  ;;  %v466_v20 = vadd.f32 %v459_v25, %v434_v51 }
 0x148   :  { %v452_v21 = vmul.f32 1.442695, %v445_v62  ;;  %v470_v23 = vadd.f32 %v466_v20, %v430_v28 }
 0x14a   :  { %556 = vpow2.f32 %v452_v21  ;;  %v485_v29 = vsel %vm484_vm0, %v483_v22, %v470_v23 }
 0x14b   :  { %v488_v30 = vsel %vm487_vm1, %v486_v26, %v485_v29  ;;  %558 = vlog2.f32 %v421_v1 }
 0x150   :  { %v557_v18 = vpop.eup %556 }
 0x151   :  { %v457_v31 = vadd.f32 1.0, %v557_v18  ;;  %v559_v32 = vpop.eup %558 }
 0x152   :  { %v429_v19 = vmul.f32 0.6931472, %v559_v32 }
 0x153   :  { %560 = vlog2.f32 %v457_v31 }
 0x154   :  { %v433_v37 = vadd.f32 %v429_v19, %v401_v33 }
 0x159   :  { %v561_v2 = vpop.eup %560 }
 0x15a   :  { %v465_v35 = vmul.f32 0.6931472, %v561_v2 }
 0x15c   :  { %v469_v36 = vadd.f32 %v465_v35, %v437_v34 }
 0x15e   :  { %v473_v39 = vadd.f32 %v469_v36, %v433_v37 }
 0x160   :  { %v489_v0 = vrot.slane %v473_v39, 5 }
 0x162   :  { %v491_v41 = vsel %vm490_vm2, %v489_v0, %v488_v30 }
 0x163   :  { %v493_v42 = vmul.f32 %v491_v41, %v477_v40 }
 0x165   :  { %494 = vst [vmem:[%s835_s7] sm:$0xf] %v493_v42 }

// kernel: decoder_ghnn_forward.2
= control target key start
LH: loop header
LB: loop body
LE: loop exit
PB: predicated region body
PF: predicated region fallthrough
CT: control target
= control target key end

     0   :  { %s1832_s12 = smov 0   ;;  %s1834_s13 = smov 0   ;;  %s2742_s0 = inlined_call_operand.vmem [shape: f32[8,32], index: 0, kind: input, shape index: {}]   ;;  %s2743_s1 = inlined_call_operand.vmem [shape: f32[8,1], index: 1, kind: input, shape index: {}]   ;;  %s2744_s2 = inlined_call_operand.vmem [shape: f32[300,32], index: 2, kind: input, shape index: {}]   ;;  %s2745_s3 = inlined_call_operand.vmem [shape: f32[8,300], index: 3, kind: output, shape index: {}]  }
   0x1   :  { %s1836_s14 = smov 0  }
   0x2 LB: > { %s1845_s15 = sadd.s32 4294967295, %s1743_s14   ;;  %s1847_s16 = sadd.s32 1, %s1743_s14   ;;  %s1743_s14 = sphi %s1836_s14, %s2787_s14   ;;  %s1739_s13 = sphi %s1834_s13, %s2786_s13   ;;  %s1735_s12 = sphi %s1832_s12, %s2785_s12  }
   0x3   : > { %s85_s17 = ssub.s32 %s1743_s14, %s1847_s16  ;;  %s88_s18 = sadd.s32 1, %s1739_s13 }
   0x4   : > { %p86_p0 = scmp.eq.s32.totalorder %s85_s17, 0  ;;  %p98_p1 = scmp.ne.s32.totalorder %s1739_s13, %s1735_s12 }
   0x5   : > { %p99_p2 = scmp.eq.s32.totalorder %s1845_s15, 1  ;;  %p1453_p3 = scmp.ge.s32.totalorder %s1743_s14, 1 }
   0x6   : > { %s1855_s19 = scalar_select %p86_p0, %s1739_s13, %s88_s18  }
   0x7   : > { %p1857_p4 = por %p99_p2, %p98_p1  ;;  %p146_p5 = scmp.lt.s32.totalorder %s1743_s14, 3 }
   0x9   : > { %p147_p6 = pnand %p1453_p3, %p146_p5 }
   0xa   : > { %s1455_s21 = sshll.u32 (!%p147_p6), %s1845_s15, 5  ;;  %s170_s30 = sand.u32 (!%p147_p6), 1, %s1735_s12  }
   0xb   : > { %150 = sbr.rel (%p147_p6) target bundleno = 531 (0x213), region = 32  ;;  %p178_p7 = scmp.lt.s32.totalorder (!%p147_p6), %s1455_s21, 37 }
   0xc   : > { %s1454_s4 = sshll.u32 (!%p147_p6), %s170_s30, 4 }
   0xd   : > { %s2443_s5 = scalar_lea.vmem (!%p147_p6), [#allocation2], %s1454_s4  }
  0x10   : > { %s2789_s21 = smov (!%p178_p7, %s1455_s21), 37  ;;  %vm226_vm0 = vcmask 261120   ;;  %s1458_s6 = sshll.u32 (%p1857_p4), %s1845_s15, 1 }
  0x11   : > { %s1456_s22 = sshll.u32 %s2789_s21, 3  ;;  %s1488_s7 = sshll.u32 (%p1857_p4), %s1845_s15, 4 }
  0x12   : > { %s1865_s25 = scalar_lea.vmem %s2744_s2, %s1456_s22  ;;  %s1043_s8 = ssub.s32 (%p1857_p4), 3, %s1458_s6 }
  0x13   : > { %v209_v0 = vld [vmem:[%s1865_s25 + $0x78] sm:$0xff]  ;;  %v208_v1 = vld [vmem:[%s1865_s25 + $0x70] sm:$0xff]  ;;  %v207_v2 = vld [vmem:[%s1865_s25 + $0x68] sm:$0xff]  ;;  %s2454_s11 = scalar_lea.vmem (%p1857_p4), %s2745_s3, %s1488_s7   ;;  %p1044_p8 = scmp.lt.s32.totalorder (%p1857_p4), %s1043_s8, 2 }
  0x14   : > { %v276_v3 = vsel %vm226_vm0, %v209_v0, 0  ;;  %v273_v4 = vsel %vm226_vm0, %v208_v1, 0  ;;  %v270_v5 = vsel %vm226_vm0, %v207_v2, 0  ;;  %v206_v6 = vld [vmem:[%s1865_s25 + $0x60] sm:$0xff]  ;;  %v205_v7 = vld [vmem:[%s1865_s25 + $0x58] sm:$0xff]  ;;  %v204_v17 = vld [vmem:[%s1865_s25 + $0x50] sm:$0xff] }
  0x15   : > { %v1875_v8 = vand.u32 4294901760, %v276_v3  ;;  %v1877_v9 = vand.u32 4294901760, %v273_v4  ;;  %v1879_v10 = vand.u32 4294901760, %v270_v5  ;;  %v267_v11 = vsel %vm226_vm0, %v206_v6, 0  ;;  %v203_v26 = vld [vmem:[%s1865_s25 + $0x48] sm:$0xff]  ;;  %v202_v34 = vld [vmem:[%s1865_s25 + $0x40] sm:$0xff] }
  0x16   : > { %v1882_v12 = vand.u32 4294901760, %v267_v11  ;;  %v264_v16 = vsel %vm226_vm0, %v205_v7, 0  ;;  %v261_v21 = vsel %vm226_vm0, %v204_v17, 0  ;;  %v258_v29 = vsel %vm226_vm0, %v203_v26, 0  ;;  %v201_v41 = vld [vmem:[%s1865_s25 + $0x38] sm:$0xff]  ;;  %v200_v48 = vld [vmem:[%s1865_s25 + $0x30] sm:$0xff] }
  0x17   : > { %327 = vmatpush.xpose.msra.mxu0 %v1875_v8  ;;  %v1886_v13 = vsub.f32 %v276_v3, %v1875_v8  ;;  %523 = vmatpush.xpose.msra.mxu3 %v1875_v8  ;;  %v1890_v14 = vsub.f32 %v273_v4, %v1877_v9  ;;  %v1893_v15 = vsub.f32 %v270_v5, %v1879_v10  ;;  %v1900_v20 = vand.u32 4294901760, %v264_v16  ;;  %v199_v55 = vld [vmem:[%s1865_s25 + $0x28] sm:$0xff]  ;;  %v198_v62 = vld [vmem:[%s1865_s25 + $0x20] sm:$0xff]  ;;  %v197_v5 = vld [vmem:[%s1865_s25 + $0x18] sm:$0xff] }
  0x18   : > { %v1913_v25 = vsub.f32 %v267_v11, %v1882_v12  ;;  %v1917_v28 = vand.u32 4294901760, %v261_v21  ;;  %v1931_v35 = vand.u32 4294901760, %v258_v29  ;;  %v255_v36 = vsel %vm226_vm0, %v202_v34, 0 }
  0x19   : > { %470 = vmatpush.xpose.msra.mxu2 %v1886_v13  ;;  %v369_v18 = vand.u32 4294901760, %v1886_v13  ;;  %v375_v19 = vand.u32 4294901760, %v1890_v14  ;;  %v381_v24 = vand.u32 4294901760, %v1893_v15  ;;  %v1926_v33 = vsub.f32 %v264_v16, %v1900_v20 }
  0x1a   : > { %v387_v32 = vand.u32 4294901760, %v1913_v25  ;;  %v1940_v40 = vsub.f32 %v261_v21, %v1917_v28  ;;  %v1946_v42 = vsub.f32 %v258_v29, %v1931_v35  ;;  %v1948_v43 = vand.u32 4294901760, %v255_v36 }
  0x1b   : > { %329 = vmatpush.xpose.msra.mxu0 %v1877_v9  ;;  %v370_v22 = vsub.f32 %v1886_v13, %v369_v18  ;;  %525 = vmatpush.xpose.msra.mxu3 %v1877_v9  ;;  %v376_v23 = vsub.f32 %v1890_v14, %v375_v19  ;;  %v382_v31 = vsub.f32 %v1893_v15, %v381_v24  ;;  %v393_v39 = vand.u32 4294901760, %v1926_v33 }
  0x1c   : > { %v388_v38 = vsub.f32 %v1913_v25, %v387_v32  ;;  %v399_v46 = vand.u32 4294901760, %v1940_v40  ;;  %v252_v47 = vsel %vm226_vm0, %v201_v41, 0  ;;  %v405_v49 = vand.u32 4294901760, %v1946_v42  ;;  %v224_v41 = vld [vmem:[%s1865_s25 + $0xf0] sm:$0xff] }
  0x1d   : > { %v371_v27 = vand.u32 4294901760, %v370_v22  ;;  %473 = vmatpush.xpose.msra.mxu2 %v1890_v14  ;;  %v377_v30 = vand.u32 4294901760, %v376_v23  ;;  %v383_v37 = vand.u32 4294901760, %v382_v31  ;;  %v394_v45 = vsub.f32 %v1926_v33, %v393_v39  ;;  %v196_v22 = vld [vmem:[%s1865_s25 + $0x10] sm:$0xff]  ;;  %v225_v31 = vld [vmem:[%s1865_s25 + $0xf8] sm:$0xff] }
  0x1e   : > { %v389_v44 = vand.u32 4294901760, %v388_v38  ;;  %v1961_v50 = vsub.f32 %v255_v36, %v1948_v43  ;;  %v400_v52 = vsub.f32 %v1940_v40, %v399_v46  ;;  %v1967_v53 = vand.u32 4294901760, %v252_v47  ;;  %v195_v36 = vld [vmem:[%s1865_s25 + $0x8] sm:$0xff]  ;;  %v217_v14 = vld [vmem:[%s1865_s25 + $0xb8] sm:$0xff] }
  0x1f   : > { %372 = vmatpush.xpose.msra.mxu1 %v371_v27  ;;  %331 = vmatpush.xpose.msra.mxu0 %v1879_v10  ;;  %v395_v51 = vand.u32 4294901760, %v394_v45  ;;  %v249_v54 = vsel %vm226_vm0, %v200_v48, 0  ;;  %v406_v56 = vsub.f32 %v1946_v42, %v405_v49  ;;  %v246_v61 = vsel %vm226_vm0, %v199_v55, 0 }
  0x20   : > { %527 = vmatpush.xpose.msra.mxu3 %v1879_v10  ;;  %v411_v57 = vand.u32 4294901760, %v1961_v50  ;;  %v401_v58 = vand.u32 4294901760, %v400_v52  ;;  %v1979_v59 = vsub.f32 %v252_v47, %v1967_v53  ;;  %v1981_v60 = vand.u32 4294901760, %v249_v54  ;;  %v194_v52 = vld [vmem:[%s1865_s25] sm:$0xff] }
  0x21   : > { %476 = vmatpush.xpose.msra.mxu2 %v1893_v15  ;;  %v407_v63 = vand.u32 4294901760, %v406_v56  ;;  %v1995_v3 = vand.u32 4294901760, %v246_v61  ;;  %v243_v4 = vsel %vm226_vm0, %v198_v62, 0  ;;  %v240_v21 = vsel %vm226_vm0, %v197_v5, 0 }
  0x22   : > { %v412_v0 = vsub.f32 %v1961_v50, %v411_v57  ;;  %v417_v1 = vand.u32 4294901760, %v1979_v59  ;;  %v1993_v2 = vsub.f32 %v249_v54, %v1981_v60  ;;  %v2001_v6 = vand.u32 4294901760, %v243_v4 }
  0x23   : > { %378 = vmatpush.xpose.msra.mxu1 %v377_v30  ;;  %333 = vmatpush.xpose.msra.mxu0 %v1882_v12  ;;  %v2009_v17 = vsub.f32 %v246_v61, %v1995_v3  ;;  %v2023_v30 = vand.u32 4294901760, %v240_v21  ;;  %v237_v34 = vsel %vm226_vm0, %v196_v22, 0  ;;  %v324_v38 = vsel %vm226_vm0, %v225_v31, 0 }
  0x24   : > { %529 = vmatpush.xpose.msra.mxu3 %v1882_v12  ;;  %v413_v7 = vand.u32 4294901760, %v412_v0  ;;  %v418_v11 = vsub.f32 %v1979_v59, %v417_v1  ;;  %v2752_v16 = vand.u32 4294901760, %v1993_v2  ;;  %v2016_v23 = vsub.f32 %v243_v4, %v2001_v6 }
  0x25   : > { %479 = vmatpush.xpose.msra.mxu2 %v1913_v25  ;;  %v2751_v29 = vand.u32 4294901760, %v2009_v17  ;;  %v2038_v47 = vsub.f32 %v240_v21, %v2023_v30  ;;  %v2040_v48 = vand.u32 4294901760, %v237_v34  ;;  %v2046_v54 = vand.u32 4294901760, %v324_v38  ;;  %v215_v25 = vld [vmem:[%s1865_s25 + $0xa8] sm:$0xff] }
  0x26   : > { %v419_v26 = vand.u32 4294901760, %v418_v11  ;;  %v424_v27 = vsub.f32 %v1993_v2, %v2752_v16  ;;  %v321_v55 = vsel %vm226_vm0, %v224_v41, 0  ;;  %v231_v4 = vsel %vm226_vm0, %v194_v52, 0 }
  0x27   : > { %384 = vmatpush.xpose.msra.mxu1 %v383_v37  ;;  %335 = vmatpush.xpose.msra.mxu0 %v1900_v20  ;;  %v2749_v37 = vand.u32 4294901760, %v2016_v23  ;;  %v430_v45 = vsub.f32 %v2009_v17, %v2751_v29  ;;  %v2747_v62 = vand.u32 4294901760, %v2038_v47  ;;  %v2062_v5 = vand.u32 4294901760, %v321_v55  ;;  %v219_v29 = vld [vmem:[%s1865_s25 + $0xc8] sm:$0xff] }
  0x28   : > { %531 = vmatpush.xpose.msra.mxu3 %v1900_v20  ;;  %v2077_v31 = vand.u32 4294901760, %v231_v4  ;;  %v306_v13 = vsel %vm226_vm0, %v219_v29, 0 }
  0x29   : > { %482 = vmatpush.xpose.msra.mxu2 %v1926_v33  ;;  %v436_v56 = vsub.f32 %v2016_v23, %v2749_v37  ;;  %v431_v61 = vand.u32 4294901760, %v430_v45  ;;  %v442_v22 = vsub.f32 %v2038_v47, %v2747_v62  ;;  %v220_v62 = vld [vmem:[%s1865_s25 + $0xd0] sm:$0xff]  ;;  %v294_v33 = vsel %vm226_vm0, %v215_v25, 0 }
  0x2b   : > { %390 = vmatpush.xpose.msra.mxu1 %v389_v44  ;;  %337 = vmatpush.xpose.msra.mxu0 %v1917_v28  ;;  %v425_v44 = vand.u32 4294901760, %v424_v27  ;;  %v437_v21 = vand.u32 4294901760, %v436_v56  ;;  %v443_v45 = vand.u32 4294901760, %v442_v22  ;;  %v221_v56 = vld [vmem:[%s1865_s25 + $0xd8] sm:$0xff] }
  0x2c   : > { %533 = vmatpush.xpose.msra.mxu3 %v1917_v28 }
  0x2d   : > { %485 = vmatpush.xpose.msra.mxu2 %v1940_v40  ;;  %v213_v40 = vld [vmem:[%s1865_s25 + $0x98] sm:$0xff] }
  0x2f   : > { %396 = vmatpush.xpose.msra.mxu1 %v395_v51  ;;  %339 = vmatpush.xpose.msra.mxu0 %v1931_v35  ;;  %v234_v51 = vsel %vm226_vm0, %v195_v36, 0  ;;  %v2082_v36 = vsub.f32 %v321_v55, %v2062_v5  ;;  %v2095_v55 = vsub.f32 %v231_v4, %v2077_v31  ;;  %v312_v4 = vsel %vm226_vm0, %v221_v56, 0 }
  0x30   : > { %535 = vmatpush.xpose.msra.mxu3 %v1931_v35  ;;  %v2058_v0 = vand.u32 4294901760, %v234_v51  ;;  %v2125_v56 = vand.u32 4294901760, %v312_v4 }
  0x31   : > { %488 = vmatpush.xpose.msra.mxu2 %v1946_v42  ;;  %v212_v42 = vld [vmem:[%s1865_s25 + $0x90] sm:$0xff] }
  0x32   : > { %v2075_v27 = vsub.f32 %v234_v51, %v2058_v0 }
  0x33   : > { %402 = vmatpush.xpose.msra.mxu1 %v401_v58  ;;  %341 = vmatpush.xpose.msra.mxu0 %v1948_v43  ;;  %v223_v58 = vld [vmem:[%s1865_s25 + $0xe8] sm:$0xff] }
  0x34   : > { %537 = vmatpush.xpose.msra.mxu3 %v1948_v43  ;;  %v318_v11 = vsel %vm226_vm0, %v223_v58, 0  ;;  %v2750_v52 = vand.u32 4294901760, %v2075_v27  ;;  %v2753_v58 = vand.u32 4294901760, %v2082_v36 }
  0x35   : > { %491 = vmatpush.xpose.msra.mxu2 %v1961_v50  ;;  %v211_v50 = vld [vmem:[%s1865_s25 + $0x88] sm:$0xff] }
  0x37   : > { %408 = vmatpush.xpose.msra.mxu1 %v407_v63  ;;  %343 = vmatpush.xpose.msra.mxu0 %v1967_v53  ;;  %v2056_v63 = vsub.f32 %v237_v34, %v2040_v48  ;;  %v222_v34 = vld [vmem:[%s1865_s25 + $0xe0] sm:$0xff] }
  0x38   : > { %539 = vmatpush.xpose.msra.mxu3 %v1967_v53 }
  0x39   : > { %494 = vmatpush.xpose.msra.mxu2 %v1979_v59  ;;  %v2761_v59 = vand.u32 4294901760, %v1993_v2 }
  0x3b   : > { %414 = vmatpush.xpose.msra.mxu1 %v413_v7  ;;  %345 = vmatpush.xpose.msra.mxu0 %v1981_v60  ;;  %v2066_v7 = vsub.f32 %v324_v38, %v2046_v54  ;;  %v2084_v38 = vand.u32 4294901760, %v318_v11 }
  0x3c   : > { %541 = vmatpush.xpose.msra.mxu3 %v1981_v60 }
  0x3d   : > { %497 = vmatpush.xpose.msra.mxu2 %v1993_v2  ;;  %v2748_v41 = vand.u32 4294901760, %v2066_v7  ;;  %v2762_v2 = vand.u32 4294901760, %v2009_v17 }
  0x3f   : > { %420 = vmatpush.xpose.msra.mxu1 %v419_v26  ;;  %347 = vmatpush.xpose.msra.mxu0 %v1995_v3  ;;  %v2746_v26 = vand.u32 4294901760, %v2056_v63 }
  0x40   : > { %543 = vmatpush.xpose.msra.mxu3 %v1995_v3 }
  0x41   : > { %500 = vmatpush.xpose.msra.mxu2 %v2009_v17  ;;  %v448_v51 = vsub.f32 %v2056_v63, %v2746_v26  ;;  %v2755_v26 = vand.u32 4294901760, %v2095_v55 }
  0x43   : > { %426 = vmatpush.xpose.msra.mxu1 %v425_v44  ;;  %349 = vmatpush.xpose.msra.mxu0 %v2001_v6  ;;  %v315_v44 = vsel %vm226_vm0, %v222_v34, 0  ;;  %v449_v34 = vand.u32 4294901760, %v448_v51 }
  0x44   : > { %545 = vmatpush.xpose.msra.mxu3 %v2001_v6  ;;  %v2107_v22 = vand.u32 4294901760, %v315_v44 }
  0x45   : > { %503 = vmatpush.xpose.msra.mxu2 %v2016_v23 }
  0x46   : > { %v2123_v51 = vsub.f32 %v315_v44, %v2107_v22 }
  0x47   : > { %432 = vmatpush.xpose.msra.mxu1 %v431_v61  ;;  %351 = vmatpush.xpose.msra.mxu0 %v2023_v30  ;;  %v2101_v61 = vsub.f32 %v318_v11, %v2084_v38  ;;  %v454_v11 = vsub.f32 %v2075_v27, %v2750_v52  ;;  %v309_v52 = vsel %vm226_vm0, %v220_v62, 0 }
  0x48   : > { %547 = vmatpush.xpose.msra.mxu3 %v2023_v30 }
  0x49   : > { %506 = vmatpush.xpose.msra.mxu2 %v2038_v47  ;;  %v2754_v37 = vand.u32 4294901760, %v2101_v61  ;;  %v455_v16 = vand.u32 4294901760, %v454_v11  ;;  %v2144_v11 = vand.u32 4294901760, %v309_v52 }
  0x4b   : > { %438 = vmatpush.xpose.msra.mxu1 %v437_v21  ;;  %353 = vmatpush.xpose.msra.mxu0 %v2040_v48  ;;  %v711_v21 = vsub.f32 %v2066_v7, %v2748_v41  ;;  %v717_v41 = vsub.f32 %v2082_v36, %v2753_v58  ;;  %v460_v58 = vsub.f32 %v2095_v55, %v2755_v26 }
  0x4c   : > { %549 = vmatpush.xpose.msra.mxu3 %v2040_v48  ;;  %v723_v62 = vsub.f32 %v2101_v61, %v2754_v37  ;;  %v2158_v29 = vsub.f32 %v309_v52, %v2144_v11 }
  0x4d   : > { %509 = vmatpush.xpose.msra.mxu2 %v2056_v63  ;;  %v718_v44 = vand.u32 4294901760, %v717_v41  ;;  %v461_v41 = vand.u32 4294901760, %v460_v58 }
  0x4e   : > { %v724_v37 = vand.u32 4294901760, %v723_v62  ;;  %v740_v62 = vand.u32 4294901760, %v2158_v29 }
  0x4f   : > { %444 = vmatpush.xpose.msra.mxu1 %v443_v45  ;;  %355 = vmatpush.xpose.msra.mxu0 %v2058_v0  ;;  %v712_v45 = vand.u32 4294901760, %v711_v21  ;;  %v728_v21 = vand.u32 4294901760, %v2123_v51 }
  0x50   : > { %551 = vmatpush.xpose.msra.mxu3 %v2058_v0 }
  0x51   : > { %512 = vmatpush.xpose.msra.mxu2 %v2075_v27 }
  0x53   : > { %450 = vmatpush.xpose.msra.mxu1 %v449_v34  ;;  %357 = vmatpush.xpose.msra.mxu0 %v2077_v31  ;;  %v2142_v34 = vsub.f32 %v312_v4, %v2125_v56  ;;  %v729_v4 = vsub.f32 %v2123_v51, %v728_v21 }
  0x54   : > { %553 = vmatpush.xpose.msra.mxu3 %v2077_v31 }
  0x55   : > { %515 = vmatpush.xpose.msra.mxu2 %v2095_v55  ;;  %v734_v26 = vand.u32 4294901760, %v2142_v34 }
  0x57   : > { %564 = vmatpush.xpose.msrb.mxu0 %v369_v18  ;;  %v218_v18 = vld [vmem:[%s1865_s25 + $0xc0] sm:$0xff]  ;;  %456 = vmatpush.xpose.msra.mxu1 %v455_v16  ;;  %v735_v52 = vsub.f32 %v2142_v34, %v734_v26 }
  0x58   : > { %713 = vmatpush.xpose.msrb.mxu3 %v712_v45  ;;  %v2151_v45 = vand.u32 4294901760, %v306_v13  ;;  %v303_v16 = vsel %vm226_vm0, %v218_v18, 0  ;;  %v300_v18 = vsel %vm226_vm0, %v217_v14, 0 }
  0x59   : > { %668 = vmatpush.xpose.msrb.mxu2 %v2046_v54  ;;  %v2169_v58 = vand.u32 4294901760, %v303_v16 }
  0x5b   : > { %568 = vmatpush.xpose.msrb.mxu0 %v375_v19  ;;  %462 = vmatpush.xpose.msra.mxu1 %v461_v41  ;;  %v2167_v19 = vsub.f32 %v306_v13, %v2151_v45  ;;  %v736_v13 = vand.u32 4294901760, %v735_v52  ;;  %v741_v41 = vsub.f32 %v2158_v29, %v740_v62 }
  0x5c   : > { %719 = vmatpush.xpose.msrb.mxu3 %v718_v44  ;;  %v730_v44 = vand.u32 4294901760, %v729_v4 }
  0x5d   : > { %670 = vmatpush.xpose.msrb.mxu2 %v2062_v5  ;;  %v2756_v15 = vand.u32 4294901760, %v2167_v19  ;;  %v742_v14 = vand.u32 4294901760, %v741_v41 }
  0x5f   : > { %631 = vmatpush.xpose.msrb.mxu1 %v1875_v8  ;;  %572 = vmatpush.xpose.msrb.mxu0 %v381_v24  ;;  %v216_v8 = vld [vmem:[%s1865_s25 + $0xb0] sm:$0xff]  ;;  %v2183_v24 = vsub.f32 %v303_v16, %v2169_v58 }
  0x60   : > { %725 = vmatpush.xpose.msrb.mxu3 %v724_v37  ;;  %v2185_v37 = vand.u32 4294901760, %v300_v18 }
  0x61   : > { %672 = vmatpush.xpose.msrb.mxu2 %v2084_v38  ;;  %v2757_v4 = vand.u32 4294901760, %v2183_v24 }
  0x62   : > { %v2201_v16 = vsub.f32 %v300_v18, %v2185_v37 }
  0x63   : > { %633 = vmatpush.xpose.msrb.mxu1 %v1877_v9  ;;  %576 = vmatpush.xpose.msrb.mxu0 %v387_v32  ;;  %v297_v9 = vsel %vm226_vm0, %v216_v8, 0  ;;  %v747_v32 = vsub.f32 %v2167_v19, %v2756_v15  ;;  %v2224_v15 = vand.u32 4294901760, %v294_v33 }
  0x64   : > { %731 = vmatpush.xpose.msrb.mxu3 %v730_v44  ;;  %v2203_v44 = vand.u32 4294901760, %v297_v9  ;;  %v2758_v41 = vand.u32 4294901760, %v2201_v16 }
  0x65   : > { %674 = vmatpush.xpose.msrb.mxu2 %v2107_v22  ;;  %v748_v18 = vand.u32 4294901760, %v747_v32 }
  0x66   : > { %v2222_v25 = vsub.f32 %v297_v9, %v2203_v44 }
  0x67   : > { %635 = vmatpush.xpose.msrb.mxu1 %v1879_v10  ;;  %580 = vmatpush.xpose.msrb.mxu0 %v393_v39  ;;  %v192_v10 = vld [vmem:[%s2742_s0] sm:$0xff] }
  0x68   : > { %737 = vmatpush.xpose.msrb.mxu3 %v736_v13  ;;  %v214_v39 = vld [vmem:[%s1865_s25 + $0xa0] sm:$0xff]  ;;  %v228_v52 = vsel %vm226_vm0, %v192_v10, 0  ;;  %v753_v13 = vsub.f32 %v2183_v24, %v2757_v4 }
  0x69   : > { %676 = vmatpush.xpose.msrb.mxu2 %v2125_v56  ;;  %v2212_v8 = vand.u32 4294901760, %v228_v52  ;;  %v291_v10 = vsel %vm226_vm0, %v214_v39, 0  ;;  %v764_v39 = vand.u32 4294901760, %v2222_v25 }
  0x6a   : > { %v754_v9 = vand.u32 4294901760, %v753_v13  ;;  %v2240_v32 = vand.u32 4294901760, %v291_v10 }
  0x6b   : > { %637 = vmatpush.xpose.msrb.mxu1 %v1882_v12  ;;  %584 = vmatpush.xpose.msrb.mxu0 %v399_v46  ;;  %v2228_v12 = vsub.f32 %v228_v52, %v2212_v8  ;;  %v2247_v52 = vsub.f32 %v294_v33, %v2224_v15  ;;  %v765_v13 = vsub.f32 %v2222_v25, %v764_v39 }
  0x6c   : > { %743 = vmatpush.xpose.msrb.mxu3 %v742_v14  ;;  %464 = vmatmul.f32.vlgmr.msra.gmra.mxu1 %v2212_v8  ;;  %v759_v14 = vsub.f32 %v2201_v16, %v2758_v41  ;;  %v2261_v33 = vsub.f32 %v291_v10, %v2240_v32 }
  0x6d   : > { %678 = vmatpush.xpose.msrb.mxu2 %v2144_v11  ;;  %v2235_v46 = vand.u32 4294901760, %v2228_v12 }
  0x6e   : > { %518 = vmatmul.f32.vlgmr.msra.gmra.mxu2 %v2228_v12 }
  0x6f   : > { %639 = vmatpush.xpose.msrb.mxu1 %v1900_v20  ;;  %588 = vmatpush.xpose.msrb.mxu0 %v405_v49  ;;  %v361_v4 = vsub.f32 %v2228_v12, %v2235_v46  ;;  %v288_v20 = vsel %vm226_vm0, %v213_v40, 0  ;;  %v2759_v40 = vand.u32 4294901760, %v2247_v52 }
  0x70   : > { %749 = vmatpush.xpose.msrb.mxu3 %v748_v18  ;;  %v760_v18 = vand.u32 4294901760, %v759_v14  ;;  %v2267_v41 = vand.u32 4294901760, %v288_v20 }
  0x71   : > { %680 = vmatpush.xpose.msrb.mxu2 %v2151_v45  ;;  %557 = vmatmul.f32.vlgmr.msra.gmra.mxu3 %v2235_v46  ;;  %v2255_v49 = vand.u32 4294901760, %v361_v4  ;;  %v766_v4 = vand.u32 4294901760, %v765_v13  ;;  %v771_v10 = vsub.f32 %v2247_v52, %v2759_v40 }
  0x73   : > { %641 = vmatpush.xpose.msrb.mxu1 %v1917_v28  ;;  %592 = vmatpush.xpose.msrb.mxu0 %v411_v57  ;;  %v285_v28 = vsel %vm226_vm0, %v212_v42, 0  ;;  %v776_v57 = vand.u32 4294901760, %v2261_v33  ;;  %v210_v42 = vld [vmem:[%s1865_s25 + $0x80] sm:$0xff] }
  0x74   : > { %755 = vmatpush.xpose.msrb.mxu3 %v754_v9  ;;  %363 = vmatmul.f32.vlgmr.msra.gmra.mxu0 %v2255_v49  ;;  %v2281_v9 = vsub.f32 %v288_v20, %v2267_v41  ;;  %v2283_v14 = vand.u32 4294901760, %v285_v28 }
  0x75   : > { %682 = vmatpush.xpose.msrb.mxu2 %v2169_v58 }
  0x76   : > { %v782_v20 = vand.u32 4294901760, %v2281_v9  ;;  %v2296_v13 = vsub.f32 %v285_v28, %v2283_v14 }
  0x77   : > { %643 = vmatpush.xpose.msrb.mxu1 %v1931_v35  ;;  %596 = vmatpush.xpose.msrb.mxu0 %v417_v1  ;;  %v282_v35 = vsel %vm226_vm0, %v211_v50, 0  ;;  %v777_v1 = vsub.f32 %v2261_v33, %v776_v57 }
  0x78   : > { %761 = vmatpush.xpose.msrb.mxu3 %v760_v18  ;;  %v772_v18 = vand.u32 4294901760, %v771_v10  ;;  %v2298_v40 = vand.u32 4294901760, %v282_v35  ;;  %v788_v28 = vand.u32 4294901760, %v2296_v13 }
  0x79   : > { %684 = vmatpush.xpose.msrb.mxu2 %v2185_v37  ;;  %v778_v50 = vand.u32 4294901760, %v777_v1 }
  0x7a   : > { %v2310_v10 = vsub.f32 %v282_v35, %v2298_v40 }
  0x7b   : > { %645 = vmatpush.xpose.msrb.mxu1 %v1948_v43  ;;  %600 = vmatpush.xpose.msrb.mxu0 %v2761_v59  ;;  %v279_v43 = vsel %vm226_vm0, %v210_v42, 0  ;;  %v789_v42 = vsub.f32 %v2296_v13, %v788_v28 }
  0x7c   : > { %767 = vmatpush.xpose.msrb.mxu3 %v766_v4  ;;  %v783_v4 = vsub.f32 %v2281_v9, %v782_v20  ;;  %v2312_v59 = vand.u32 4294901760, %v279_v43  ;;  %v794_v1 = vand.u32 4294901760, %v2310_v10 }
  0x7d   : > { %686 = vmatpush.xpose.msrb.mxu2 %v2203_v44 }
  0x7e   : > { %v784_v17 = vand.u32 4294901760, %v783_v4  ;;  %v2323_v35 = vsub.f32 %v279_v43, %v2312_v59  ;;  %v2765_v43 = vand.u32 4294901760, %v2056_v63  ;;  %v2770_v63 = vand.u32 4294901760, %v2101_v61 }
  0x7f   : > { %647 = vmatpush.xpose.msrb.mxu1 %v1967_v53  ;;  %604 = vmatpush.xpose.msrb.mxu0 %v2762_v2  ;;  %v2763_v53 = vand.u32 4294901760, %v2016_v23  ;;  %v790_v23 = vand.u32 4294901760, %v789_v42 }
  0x80   : > { %773 = vmatpush.xpose.msrb.mxu3 %v772_v18  ;;  %v795_v18 = vsub.f32 %v2310_v10, %v794_v1  ;;  %v800_v2 = vand.u32 4294901760, %v2323_v35 }
  0x81   : > { %688 = vmatpush.xpose.msrb.mxu2 %v2224_v15 }
  0x83   : > { %649 = vmatpush.xpose.msrb.mxu1 %v1981_v60  ;;  %608 = vmatpush.xpose.msrb.mxu0 %v2763_v53  ;;  %v2764_v60 = vand.u32 4294901760, %v2038_v47  ;;  %v801_v47 = vsub.f32 %v2323_v35, %v800_v2 }
  0x84   : > { %779 = vmatpush.xpose.msrb.mxu3 %v778_v50  ;;  %v2766_v50 = vand.u32 4294901760, %v2075_v27  ;;  %v2774_v27 = vand.u32 4294901760, %v2247_v52 }
  0x85   : > { %690 = vmatpush.xpose.msrb.mxu2 %v2240_v32  ;;  %v802_v4 = vand.u32 4294901760, %v801_v47 }
  0x87   : > { %651 = vmatpush.xpose.msrb.mxu1 %v1995_v3  ;;  %612 = vmatpush.xpose.msrb.mxu0 %v2764_v60  ;;  %v796_v3 = vand.u32 4294901760, %v795_v18 }
  0x88   : > { %785 = vmatpush.xpose.msrb.mxu3 %v784_v17 }
  0x89   : > { %692 = vmatpush.xpose.msrb.mxu2 %v2267_v41 }
  0x8b   : > { %653 = vmatpush.xpose.msrb.mxu1 %v2001_v6  ;;  %616 = vmatpush.xpose.msrb.mxu0 %v2765_v43  ;;  %v2767_v6 = vand.u32 4294901760, %v2095_v55 }
  0x8c   : > { %791 = vmatpush.xpose.msrb.mxu3 %v790_v23 }
  0x8d   : > { %694 = vmatpush.xpose.msrb.mxu2 %v2283_v14 }
  0x8f   : > { %655 = vmatpush.xpose.msrb.mxu1 %v2023_v30  ;;  %620 = vmatpush.xpose.msrb.mxu0 %v2766_v50  ;;  %v2768_v30 = vand.u32 4294901760, %v2066_v7 }
  0x90   : > { %797 = vmatpush.xpose.msrb.mxu3 %v796_v3 }
  0x91   : > { %696 = vmatpush.xpose.msrb.mxu2 %v2298_v40 }
  0x93   : > { %657 = vmatpush.xpose.msrb.mxu1 %v2040_v48  ;;  %624 = vmatpush.xpose.msrb.mxu0 %v2767_v6  ;;  %v2769_v48 = vand.u32 4294901760, %v2082_v36 }
  0x94   : > { %803 = vmatpush.xpose.msrb.mxu3 %v802_v4 }
  0x95   : > { %698 = vmatpush.xpose.msrb.mxu2 %v2312_v59 }
  0x96   : > { %626 = vmatmul.f32.vlgmr.msrb.gmra.mxu0 %v2212_v8 }
  0x97   : > { %811 = vmatpush.xpose.msra.mxu0 %v2066_v7  ;;  %659 = vmatpush.xpose.msrb.mxu1 %v2058_v0  ;;  %v1809_v0 = vmov 0   ;;  %v2772_v7 = vand.u32 4294901760, %v2183_v24 }
  0x98   : > { %972 = vmatpush.xpose.msra.mxu3 %v2046_v54  ;;  %704 = vmatmul.f32.vlgmr.msrb.gmra.mxu2 %v2255_v49 }
  0x99   : > { %905 = vmatpush.xpose.msra.mxu2 %v2768_v30  ;;  %805 = vmatmul.f32.vlgmr.msrb.gmra.mxu3 %v2212_v8 }
  0x9a   : > { %1648 = vset.pattern.permute.xlu0 %v1809_v0 }
  0x9b   : > { %814 = vmatpush.xpose.msra.mxu0 %v2082_v36  ;;  %661 = vmatpush.xpose.msrb.mxu1 %v2077_v31 }
  0x9c   : > { %974 = vmatpush.xpose.msra.mxu3 %v2062_v5 }
  0x9d   : > { %909 = vmatpush.xpose.msra.mxu2 %v2769_v48 }
  0x9e   : > { %663 = vmatmul.f32.vlgmr.msrb.gmra.mxu1 %v2212_v8 }
  0x9f   : > { %864 = vmatpush.xpose.msra.mxu1 %v2046_v54  ;;  %817 = vmatpush.xpose.msra.mxu0 %v2101_v61  ;;  %v193_v54 = vld [vmem:[%s2743_s1] sm:$0xff] }
  0xa0   : > { %976 = vmatpush.xpose.msra.mxu3 %v2084_v38  ;;  %1028 = vperm.xlu0 %1648, %v193_v54  }
  0xa1   : > { %913 = vmatpush.xpose.msra.mxu2 %v2770_v63 }
  0xa3   : > { %866 = vmatpush.xpose.msra.mxu1 %v2062_v5  ;;  %820 = vmatpush.xpose.msra.mxu0 %v2123_v51  ;;  %v2771_v5 = vand.u32 4294901760, %v2167_v19 }
  0xa4   : > { %978 = vmatpush.xpose.msra.mxu3 %v2107_v22 }
  0xa5   : > { %917 = vmatpush.xpose.msra.mxu2 %v728_v21 }
  0xa7   : > { %868 = vmatpush.xpose.msra.mxu1 %v2084_v38  ;;  %823 = vmatpush.xpose.msra.mxu0 %v2142_v34 }
  0xa8   : > { %980 = vmatpush.xpose.msra.mxu3 %v2125_v56 }
  0xa9   : > { %921 = vmatpush.xpose.msra.mxu2 %v734_v26  ;;  %v2773_v26 = vand.u32 4294901760, %v2201_v16 }
  0xab   : > { %870 = vmatpush.xpose.msra.mxu1 %v2107_v22  ;;  %826 = vmatpush.xpose.msra.mxu0 %v2158_v29 }
  0xac   : > { %982 = vmatpush.xpose.msra.mxu3 %v2144_v11 }
  0xad   : > { %925 = vmatpush.xpose.msra.mxu2 %v740_v62 }
  0xaf   : > { %872 = vmatpush.xpose.msra.mxu1 %v2125_v56  ;;  %829 = vmatpush.xpose.msra.mxu0 %v2167_v19 }
  0xb0   : > { %984 = vmatpush.xpose.msra.mxu3 %v2151_v45 }
  0xb1   : > { %929 = vmatpush.xpose.msra.mxu2 %v2771_v5 }
  0xb3   : > { %874 = vmatpush.xpose.msra.mxu1 %v2144_v11  ;;  %832 = vmatpush.xpose.msra.mxu0 %v2183_v24 }
  0xb4   : > { %986 = vmatpush.xpose.msra.mxu3 %v2169_v58 }
  0xb5   : > { %933 = vmatpush.xpose.msra.mxu2 %v2772_v7 }
  0xb7   : > { %876 = vmatpush.xpose.msra.mxu1 %v2151_v45  ;;  %835 = vmatpush.xpose.msra.mxu0 %v2201_v16 }
  0xb8   : > { %988 = vmatpush.xpose.msra.mxu3 %v2185_v37 }
  0xb9   : > { %937 = vmatpush.xpose.msra.mxu2 %v2773_v26 }
  0xbb   : > { %878 = vmatpush.xpose.msra.mxu1 %v2169_v58  ;;  %838 = vmatpush.xpose.msra.mxu0 %v2222_v25 }
  0xbc   : > { %990 = vmatpush.xpose.msra.mxu3 %v2203_v44 }
  0xbd   : > { %941 = vmatpush.xpose.msra.mxu2 %v764_v39 }
  0xbf   : > { %880 = vmatpush.xpose.msra.mxu1 %v2185_v37  ;;  %841 = vmatpush.xpose.msra.mxu0 %v2247_v52 }
  0xc0   : > { %992 = vmatpush.xpose.msra.mxu3 %v2224_v15 }
  0xc1   : > { %945 = vmatpush.xpose.msra.mxu2 %v2774_v27 }
  0xc3   : > { %882 = vmatpush.xpose.msra.mxu1 %v2203_v44  ;;  %844 = vmatpush.xpose.msra.mxu0 %v2261_v33 }
  0xc4   : > { %994 = vmatpush.xpose.msra.mxu3 %v2240_v32 }
  0xc5   : > { %949 = vmatpush.xpose.msra.mxu2 %v776_v57 }
  0xc7   : > { %884 = vmatpush.xpose.msra.mxu1 %v2224_v15  ;;  %847 = vmatpush.xpose.msra.mxu0 %v2281_v9 }
  0xc8   : > { %996 = vmatpush.xpose.msra.mxu3 %v2267_v41 }
  0xc9   : > { %953 = vmatpush.xpose.msra.mxu2 %v782_v20 }
  0xcb   : > { %886 = vmatpush.xpose.msra.mxu1 %v2240_v32  ;;  %850 = vmatpush.xpose.msra.mxu0 %v2296_v13 }
  0xcc   : > { %998 = vmatpush.xpose.msra.mxu3 %v2283_v14 }
  0xcd   : > { %957 = vmatpush.xpose.msra.mxu2 %v788_v28 }
  0xcf   : > { %888 = vmatpush.xpose.msra.mxu1 %v2267_v41  ;;  %853 = vmatpush.xpose.msra.mxu0 %v2310_v10 }
  0xd0   : > { %1000 = vmatpush.xpose.msra.mxu3 %v2298_v40 }
  0xd1   : > { %961 = vmatpush.xpose.msra.mxu2 %v794_v1 }
  0xd3   : > { %890 = vmatpush.xpose.msra.mxu1 %v2283_v14  ;;  %856 = vmatpush.xpose.msra.mxu0 %v2323_v35 }
  0xd4   : > { %1002 = vmatpush.xpose.msra.mxu3 %v2312_v59 }
  0xd5   : > { %965 = vmatpush.xpose.msra.mxu2 %v800_v2 }
  0xd6   : > { %859 = vmatmul.f32.vlgmr.msra.gmra.mxu0 %v2228_v12 }
  0xd7   : > { %892 = vmatpush.xpose.msra.mxu1 %v2298_v40  ;;  %1004 = vmatmul.f32.vlgmr.msra.gmra.mxu3 %v2212_v8 }
  0xd8   : > { %967 = vmatmul.f32.vlgmr.msra.gmra.mxu2 %v2212_v8 }
  0xdb   : > { %894 = vmatpush.xpose.msra.mxu1 %v2312_v59 }
  0xde   : > { %898 = vmatmul.f32.vlgmr.msra.gmra.mxu1 %v2235_v46 }
  0xe9   : > { %v465_v31 = vpop.f32.mrf.mxu1 }
  0xf1   : > { %v364_v36 = vpop.f32.mrf.mxu0  ;;  %v519_v55 = vpop.f32.mrf.mxu2 }
  0xf2   : > { %v466_v38 = vadd.f32 %v465_v31, %v364_v36 }
  0xf4   : > { %v520_v61 = vadd.f32 %v519_v55, %v466_v38  ;;  %v558_v22 = vpop.f32.mrf.mxu3 }
  0xf6   : > { %v559_v51 = vadd.f32 %v558_v22, %v520_v61 }
 0x112   : > { %v1029_v16 = vpop.permute.xlu0 %1028 }
 0x113   : > { %v627_v56 = vpop.f32.mrf.mxu0 }
 0x114   : > { %v628_v21 = vadd.f32 %v627_v56, %v559_v51 }
 0x11b   : > { %v664_v34 = vpop.f32.mrf.mxu1  ;;  %v705_v41 = vpop.f32.mrf.mxu2 }
 0x11c   : > { %v665_v11 = vadd.f32 %v664_v34, %v628_v21  ;;  %v806_v25 = vpop.f32.mrf.mxu3 }
 0x11d   : > { %v807_v12 = vadd.f32 %v806_v25, %v705_v41 }
 0x11e   : > { %v1010_v45 = vand.u32 2147483647, %v665_v11  ;;  %v1008_v24 = vmax.f32 %v665_v11, 0.0 }
 0x120   : > { %v1012_v29 = vsub.f32 0.0, %v1010_v45 }
 0x122   : > { %v1014_v19 = vmul.f32 1.442695, %v1012_v29 }
 0x124   : > { %1649 = vpow2.f32 %v1014_v19 }
 0x12a   : > { %v1650_v58 = vpop.eup %1649 }
 0x12b   : > { %v1018_v62 = vadd.f32 1.0, %v1650_v58 }
 0x12d   : > { %1651 = vlog2.f32 %v1018_v62 }
 0x133   : > { %v1652_v15 = vpop.eup %1651 }
 0x134   : > { %v1021_v37 = vmul.f32 0.6931472, %v1652_v15 }
 0x136   : > { %v1024_v44 = vadd.f32 %v1021_v37, %v1008_v24 }
 0x138   : > { %v1031_v8 = vmul.f32 %v1029_v16, %v1024_v44 }
 0x13a   : > { %1033 = vst [vmem:[%s2443_s5] sm:$0xff] %v1031_v8 }
 0x153   : > { %v860_v46 = vpop.f32.mrf.mxu0 }
 0x154   : > { %v861_v32 = vadd.f32 %v860_v46, %v807_v12 }
 0x15a   : > { %v1005_v33 = vpop.f32.mrf.mxu3 }
 0x15b   : > { %v899_v39 = vpop.f32.mrf.mxu1  ;;  %v968_v52 = vpop.f32.mrf.mxu2 }
 0x15c   : > { %v900_v49 = vadd.f32 %v899_v39, %v861_v32 }
 0x15e   : > { %v969_v40 = vadd.f32 %v968_v52, %v900_v49 }
 0x160   : > { %v1006_v57 = vadd.f32 %v1005_v33, %v969_v40 }
 0x162   : > { %v1011_v9 = vand.u32 2147483647, %v1006_v57  ;;  %v1009_v59 = vmax.f32 %v1006_v57, 0.0 }
 0x164   : > { %v1013_v14 = vsub.f32 0.0, %v1011_v9 }
 0x166   : > { %v1016_v20 = vmul.f32 1.442695, %v1013_v14 }
 0x168   : > { %1653 = vpow2.f32 %v1016_v20 }
 0x16e   : > { %v1654_v13 = vpop.eup %1653 }
 0x16f   : > { %v1019_v28 = vadd.f32 1.0, %v1654_v13 }
 0x171   : > { %1655 = vlog2.f32 %v1019_v28 }
 0x177   : > { %v1656_v10 = vpop.eup %1655 }
 0x178   : > { %v1023_v53 = vmul.f32 0.6931472, %v1656_v10 }
 0x17a   : > { %v1025_v17 = vadd.f32 %v1023_v53, %v1009_v59  ;;  %1041 = sbr.rel (!%p1857_p4) target bundleno = 531 (0x213), region = 36 }
 0x17c   : > { %v1032_v42 = vmul.f32 %v1029_v16, %v1025_v17 }
 0x17e   : > { %1034 = vst [vmem:[%s2443_s5 + $0x8] sm:$0xff] %v1032_v42 }
 0x17f   : > { %s2791_s8 = smov (!%p1044_p8, %s1043_s8), 2 }
 0x180   : > { %s2456_s12 = sshll.u32 %s2791_s8, 3 }
 0x181   : > { %p1463_p9 = scmp.eq.s32.totalorder %s2456_s12, 0 }
 0x182   : > { %p1054_p10 = scmp.lt.u32.totalorder (!%p1463_p9), %s2456_s12, 8 }
 0x183   : > { %1053 = sbr.rel (%p1463_p9) target bundleno = 531 (0x213), region = 40 }
 0x188   : > { %1057 = sbr.rel (%p1054_p10) target bundleno = 522 (0x20a), region = 44  ;;  %s2461_s14 = sand.u32 (!%p1054_p10), 7, %s2456_s12  }
 0x189   : > { %p1074_p11 = scmp.eq.s32.totalorder (!%p1054_p10), %s2461_s14, 0  ;;  %p1464_p12 = scmp.ne.s32.totalorder (!%p1054_p10), %s2461_s14, 0 }
 0x18d   : > { %1077 = sbr.rel (%p1464_p12) target bundleno = 457 (0x1c9), region = 59  ;;  %s1078_s15 = sshrl.u32 (!%p1464_p12), %s2456_s12, 3 }
 0x18e   : > { %s2468_s17 = sshrl.u32 (!%p1464_p12), %s1078_s15, 5 }
 0x18f   : > { %p1465_p13 = scmp.le.s32.totalorder (!%p1464_p12), %s2468_s17, 0 }
 0x192   : > { %1378 = sbr.rel (%p1465_p13) target bundleno = 440 (0x1b8), region = 140  ;;  %s2775_s18 = smov (!%p1465_p13), %s2454_s11 }
 0x193   : > { %s2776_s20 = smov (!%p1465_p13), %s2443_s5  ;;  %s2477_s21 = smov (!%p1465_p13), 0  }
 0x194   : > { %s2479_s22 = smov (!%p1465_p13), 0  }
 0x197 LB: >> { %v1089_v1 = vld [vmem:[%s1751_s20] sm:$0xff]  ;;  %v1091_v35 = vld [vmem:[%s1751_s20 + $0x8] sm:$0xff]  ;;  %v1093_v60 = vld [vmem:[%s1751_s20 + $0x10] sm:$0xff]  ;;  %s1153_s23 = sadd.s32 1, %s1755_s21  ;;  %s1083_s22 = sadd.s32 1, %s1759_s22   ;;  %s1759_s22 = sphi %s2479_s22, %s1083_s22   ;;  %s1755_s21 = sphi %s2477_s21, %s2779_s21   ;;  %s1751_s20 = sphi %s2776_s20, %s2778_s20   ;;  %s1747_s18 = sphi %s2775_s18, %s2777_s18  }
 0x198   : >> { %1090 = vst [vmem:[%s1747_s18] sm:$0xff] %v1089_v1  ;;  %v1095_v23 = vld [vmem:[%s1751_s20 + $0x18] sm:$0xff]  ;;  %p1154_p0 = scmp.ge.s32.totalorder %s1153_s23, %s2468_s17  ;;  %v1097_v18 = vld [vmem:[%s1751_s20 + $0x20] sm:$0xff]  ;;  %v1099_v2 = vld [vmem:[%s1751_s20 + $0x28] sm:$0xff]  ;;  %p1082_p1 = scmp.ge.s32.totalorder %s1083_s22, %s2468_s17 }
 0x199   : >> { %1092 = vst [vmem:[%s1747_s18 + $0x8] sm:$0xff] %v1091_v35  ;;  %v1101_v43 = vld [vmem:[%s1751_s20 + $0x30] sm:$0xff]  ;;  %v1103_v3 = vld [vmem:[%s1751_s20 + $0x38] sm:$0xff]  ;;  %v1105_v47 = vld [vmem:[%s1751_s20 + $0x40] sm:$0xff] }
 0x19a   : >> { %1094 = vst [vmem:[%s1747_s18 + $0x10] sm:$0xff] %v1093_v60  ;;  %s2793_s23 = smov (%p1154_p0, %s1153_s23), 0  ;;  %v1107_v50 = vld [vmem:[%s1751_s20 + $0x48] sm:$0xff]  ;;  %v1109_v4 = vld [vmem:[%s1751_s20 + $0x50] sm:$0xff]  ;;  %v1111_v6 = vld [vmem:[%s1751_s20 + $0x58] sm:$0xff] }
 0x19b   : >> { %1096 = vst [vmem:[%s1747_s18 + $0x18] sm:$0xff] %v1095_v23  ;;  %s1466_s24 = sshll.u32 %s2793_s23, 8  ;;  %v1113_v30 = vld [vmem:[%s1751_s20 + $0x60] sm:$0xff]  ;;  %v1115_v48 = vld [vmem:[%s1751_s20 + $0x68] sm:$0xff]  ;;  %v1117_v63 = vld [vmem:[%s1751_s20 + $0x70] sm:$0xff]  ;;  %s2779_s21 = smov %s2793_s23 }
 0x19c   : >> { %1098 = vst [vmem:[%s1747_s18 + $0x20] sm:$0xff] %v1097_v18  ;;  %s2511_s25 = scalar_lea.vmem %s2443_s5, %s1466_s24 [#allocation2]   ;;  %s2514_s26 = scalar_lea.vmem %s2454_s11, %s1466_s24   ;;  %v1119_v0 = vld [vmem:[%s1751_s20 + $0x78] sm:$0xff]  ;;  %v1121_v54 = vld [vmem:[%s1751_s20 + $0x80] sm:$0xff]  ;;  %v1123_v5 = vld [vmem:[%s1751_s20 + $0x88] sm:$0xff] }
 0x19d   : >> { %1100 = vst [vmem:[%s1747_s18 + $0x28] sm:$0xff] %v1099_v2  ;;  %v1125_v7 = vld [vmem:[%s1751_s20 + $0x90] sm:$0xff]  ;;  %v1127_v26 = vld [vmem:[%s1751_s20 + $0x98] sm:$0xff]  ;;  %v1129_v27 = vld [vmem:[%s1751_s20 + $0xa0] sm:$0xff] }
 0x19e   : >> { %1102 = vst [vmem:[%s1747_s18 + $0x30] sm:$0xff] %v1101_v43  ;;  %v1131_v31 = vld [vmem:[%s1751_s20 + $0xa8] sm:$0xff]  ;;  %v1133_v36 = vld [vmem:[%s1751_s20 + $0xb0] sm:$0xff]  ;;  %v1135_v38 = vld [vmem:[%s1751_s20 + $0xb8] sm:$0xff] }
 0x19f   : >> { %1104 = vst [vmem:[%s1747_s18 + $0x38] sm:$0xff] %v1103_v3  ;;  %v1137_v55 = vld [vmem:[%s1751_s20 + $0xc0] sm:$0xff]  ;;  %v1139_v61 = vld [vmem:[%s1751_s20 + $0xc8] sm:$0xff]  ;;  %v1141_v22 = vld [vmem:[%s1751_s20 + $0xd0] sm:$0xff] }
 0x1a0   : >> { %1106 = vst [vmem:[%s1747_s18 + $0x40] sm:$0xff] %v1105_v47  ;;  %v1143_v51 = vld [vmem:[%s1751_s20 + $0xd8] sm:$0xff]  ;;  %v1145_v56 = vld [vmem:[%s1751_s20 + $0xe0] sm:$0xff]  ;;  %v1147_v21 = vld [vmem:[%s1751_s20 + $0xe8] sm:$0xff] }
 0x1a1   : >> { %1108 = vst [vmem:[%s1747_s18 + $0x48] sm:$0xff] %v1107_v50  ;;  %v1149_v34 = vld [vmem:[%s1751_s20 + $0xf0] sm:$0xff]  ;;  %v1151_v11 = vld [vmem:[%s1751_s20 + $0xf8] sm:$0xff]  ;;  %s2778_s20 = smov %s2511_s25 }
 0x1a2   : >> { %1110 = vst [vmem:[%s1747_s18 + $0x50] sm:$0xff] %v1109_v4 }
 0x1a3   : >> { %1112 = vst [vmem:[%s1747_s18 + $0x58] sm:$0xff] %v1111_v6 }
 0x1a4   : >> { %1114 = vst [vmem:[%s1747_s18 + $0x60] sm:$0xff] %v1113_v30 }
 0x1a5   : >> { %1116 = vst [vmem:[%s1747_s18 + $0x68] sm:$0xff] %v1115_v48 }
 0x1a6   : >> { %1118 = vst [vmem:[%s1747_s18 + $0x70] sm:$0xff] %v1117_v63 }
 0x1a7   : >> { %1120 = vst [vmem:[%s1747_s18 + $0x78] sm:$0xff] %v1119_v0 }
 0x1a8   : >> { %1122 = vst [vmem:[%s1747_s18 + $0x80] sm:$0xff] %v1121_v54 }
 0x1a9   : >> { %1124 = vst [vmem:[%s1747_s18 + $0x88] sm:$0xff] %v1123_v5 }
 0x1aa   : >> { %1126 = vst [vmem:[%s1747_s18 + $0x90] sm:$0xff] %v1125_v7 }
 0x1ab   : >> { %1128 = vst [vmem:[%s1747_s18 + $0x98] sm:$0xff] %v1127_v26 }
 0x1ac   : >> { %1130 = vst [vmem:[%s1747_s18 + $0xa0] sm:$0xff] %v1129_v27 }
 0x1ad   : >> { %1132 = vst [vmem:[%s1747_s18 + $0xa8] sm:$0xff] %v1131_v31 }
 0x1ae   : >> { %1134 = vst [vmem:[%s1747_s18 + $0xb0] sm:$0xff] %v1133_v36 }
 0x1af   : >> { %1136 = vst [vmem:[%s1747_s18 + $0xb8] sm:$0xff] %v1135_v38 }
 0x1b0   : >> { %1138 = vst [vmem:[%s1747_s18 + $0xc0] sm:$0xff] %v1137_v55 }
 0x1b1   : >> { %1140 = vst [vmem:[%s1747_s18 + $0xc8] sm:$0xff] %v1139_v61 }
 0x1b2   : >> { %1142 = vst [vmem:[%s1747_s18 + $0xd0] sm:$0xff] %v1141_v22 }
 0x1b3   : >> { %1144 = vst [vmem:[%s1747_s18 + $0xd8] sm:$0xff] %v1143_v51  ;;  %1085 = sbr.rel (!%p1082_p1) target bundleno = 407 (0x197), region = 146 }
 0x1b4   : >> { %1146 = vst [vmem:[%s1747_s18 + $0xe0] sm:$0xff] %v1145_v56 }
 0x1b5   : >> { %1148 = vst [vmem:[%s1747_s18 + $0xe8] sm:$0xff] %v1147_v21 }
 0x1b6   : >> { %1150 = vst [vmem:[%s1747_s18 + $0xf0] sm:$0xff] %v1149_v34 }
 0x1b7   : >> { %1152 = vst [vmem:[%s1747_s18 + $0xf8] sm:$0xff] %v1151_v11  ;;  %s2777_s18 = smov %s2514_s26 }
 0x1b8 PF: > { %s2580_s27 = sand.u32 31, %s1078_s15   ;;  %s1489_s28 = sshll.u32 %s2468_s17, 8 }
 0x1b9   : > { %s1164_s29 = scalar_lea.vmem %s2443_s5, %s1489_s28 [#allocation2]   ;;  %s1166_s30 = scalar_lea.vmem %s2454_s11, %s1489_s28  }
 0x1ba   : > { %p1471_p2 = scmp.le.s32.totalorder %s2580_s27, 0 }
 0x1bb   : > { %s1761_s4 = smov (!%p1471_p2), %s1166_s30   ;;  %s1765_s6 = smov (!%p1471_p2), %s1164_s29  }
 0x1bc   : > { %1392 = sbr.rel (%p1471_p2) target bundleno = 457 (0x1c9), region = 151  ;;  %s1769_s7 = smov (!%p1471_p2), 0  }
 0x1bd   : > { %s1773_s8 = smov (!%p1471_p2), 0  }
 0x1c1 LB: >> { %v1176_v45 = vld [vmem:[%s1767_s6] sm:$0xff]  ;;  %s1178_s9 = sadd.s32 1, %s1771_s7  ;;  %s1170_s8 = sadd.s32 1, %s1775_s8   ;;  %s1775_s8 = sphi %s1773_s8, %s1170_s8   ;;  %s1771_s7 = sphi %s1769_s7, %s1770_s7   ;;  %s1767_s6 = sphi %s1765_s6, %s1183_s6   ;;  %s1763_s4 = sphi %s1761_s4, %s1184_s4  }
 0x1c2   : >> { %1177 = vst [vmem:[%s1763_s4] sm:$0xff] %v1176_v45  ;;  %p1179_p3 = scmp.ge.s32.totalorder %s1178_s9, %s2580_s27  ;;  %p1169_p4 = scmp.ge.s32.totalorder %s1170_s8, %s2580_s27 }
 0x1c4   : >> { %s2795_s9 = smov (%p1179_p3, %s1178_s9), 0  ;;  %1172 = sbr.rel (!%p1169_p4) target bundleno = 449 (0x1c1), region = 157 }
 0x1c5   : >> { %s1472_s10 = sshll.u32 %s2795_s9, 3  ;;  %s1770_s7 = smov %s2795_s9  }
 0x1c6   : >> { %s1183_s6 = scalar_lea.vmem %s1164_s29, %s1472_s10 [#allocation2]   ;;  %s1184_s4 = scalar_lea.vmem %s1166_s30, %s1472_s10  }
 0x1c9 PF: > { %1187 = sbr.rel (%p1074_p11) target bundleno = 522 (0x20a), region = 77  ;;  %s2592_s15 = ssub.s32 (!%p1074_p11), %s2456_s12, %s2461_s14 }
 0x1ca   : > { %s1193_s17 = sshrl.u32 (!%p1074_p11), %s2456_s12, 3  ;;  %s1190_s18 = scalar_lea.vmem (!%p1074_p11), %s2443_s5, %s2592_s15 [#allocation2] }
 0x1cb   : > { %s1192_s20 = scalar_lea.vmem (!%p1074_p11), %s2454_s11, %s2592_s15  ;;  %s2601_s21 = sshrl.u32 (!%p1074_p11), %s1193_s17, 5 }
 0x1cc   : > { %p1474_p5 = scmp.le.s32.totalorder (!%p1074_p11), %s2601_s21, 0 }
 0x1ce   : > { %1406 = sbr.rel (%p1474_p5) target bundleno = 500 (0x1f4), region = 162  ;;  %s2780_s22 = smov (!%p1474_p5), %s2454_s11 }
 0x1cf   : > { %s2781_s23 = smov (!%p1474_p5), %s2443_s5  ;;  %s2610_s24 = smov (!%p1474_p5), 0  }
 0x1d0   : > { %s2612_s25 = smov (!%p1474_p5), 0  }
 0x1d3 LB: >> { %v1204_v29 = vld [vmem:[%s1783_s23] sm:$0xff]  ;;  %v1206_v19 = vld [vmem:[%s1783_s23 + $0x8] sm:$0xff]  ;;  %v1208_v58 = vld [vmem:[%s1783_s23 + $0x10] sm:$0xff]  ;;  %s1268_s26 = sadd.s32 1, %s1787_s24  ;;  %s1198_s25 = sadd.s32 1, %s1791_s25   ;;  %s1791_s25 = sphi %s2612_s25, %s1198_s25   ;;  %s1787_s24 = sphi %s2610_s24, %s2784_s24   ;;  %s1783_s23 = sphi %s2781_s23, %s2783_s23   ;;  %s1779_s22 = sphi %s2780_s22, %s2782_s22  }
 0x1d4   : >> { %1205 = vst [vmem:[%s1779_s22] sm:$0xff] %v1204_v29  ;;  %v1210_v62 = vld [vmem:[%s1783_s23 + $0x18] sm:$0xff]  ;;  %p1269_p6 = scmp.ge.s32.totalorder %s1268_s26, %s2601_s21  ;;  %v1212_v15 = vld [vmem:[%s1783_s23 + $0x20] sm:$0xff]  ;;  %v1214_v24 = vld [vmem:[%s1783_s23 + $0x28] sm:$0xff]  ;;  %p1197_p7 = scmp.ge.s32.totalorder %s1198_s25, %s2601_s21 }
 0x1d5   : >> { %1207 = vst [vmem:[%s1779_s22 + $0x8] sm:$0xff] %v1206_v19  ;;  %v1216_v37 = vld [vmem:[%s1783_s23 + $0x30] sm:$0xff]  ;;  %v1218_v16 = vld [vmem:[%s1783_s23 + $0x38] sm:$0xff]  ;;  %v1220_v44 = vld [vmem:[%s1783_s23 + $0x40] sm:$0xff] }
 0x1d6   : >> { %1209 = vst [vmem:[%s1779_s22 + $0x10] sm:$0xff] %v1208_v58  ;;  %s2797_s26 = smov (%p1269_p6, %s1268_s26), 0  ;;  %v1222_v8 = vld [vmem:[%s1783_s23 + $0x48] sm:$0xff]  ;;  %v1224_v41 = vld [vmem:[%s1783_s23 + $0x50] sm:$0xff]  ;;  %v1226_v25 = vld [vmem:[%s1783_s23 + $0x58] sm:$0xff] }
 0x1d7   : >> { %1211 = vst [vmem:[%s1779_s22 + $0x18] sm:$0xff] %v1210_v62  ;;  %s1475_s27 = sshll.u32 %s2797_s26, 8  ;;  %v1228_v12 = vld [vmem:[%s1783_s23 + $0x60] sm:$0xff]  ;;  %v1230_v46 = vld [vmem:[%s1783_s23 + $0x68] sm:$0xff]  ;;  %v1232_v32 = vld [vmem:[%s1783_s23 + $0x70] sm:$0xff]  ;;  %s2784_s24 = smov %s2797_s26 }
 0x1d8   : >> { %1213 = vst [vmem:[%s1779_s22 + $0x20] sm:$0xff] %v1212_v15  ;;  %s2644_s28 = scalar_lea.vmem %s2443_s5, %s1475_s27 [#allocation2]   ;;  %s2647_s29 = scalar_lea.vmem %s2454_s11, %s1475_s27   ;;  %v1234_v39 = vld [vmem:[%s1783_s23 + $0x78] sm:$0xff]  ;;  %v1236_v52 = vld [vmem:[%s1783_s23 + $0x80] sm:$0xff]  ;;  %v1238_v49 = vld [vmem:[%s1783_s23 + $0x88] sm:$0xff] }
 0x1d9   : >> { %1215 = vst [vmem:[%s1779_s22 + $0x28] sm:$0xff] %v1214_v24  ;;  %v1240_v33 = vld [vmem:[%s1783_s23 + $0x90] sm:$0xff]  ;;  %v1242_v40 = vld [vmem:[%s1783_s23 + $0x98] sm:$0xff]  ;;  %v1244_v57 = vld [vmem:[%s1783_s23 + $0xa0] sm:$0xff] }
 0x1da   : >> { %1217 = vst [vmem:[%s1779_s22 + $0x30] sm:$0xff] %v1216_v37  ;;  %v1246_v9 = vld [vmem:[%s1783_s23 + $0xa8] sm:$0xff]  ;;  %v1248_v14 = vld [vmem:[%s1783_s23 + $0xb0] sm:$0xff]  ;;  %v1250_v20 = vld [vmem:[%s1783_s23 + $0xb8] sm:$0xff] }
 0x1db   : >> { %1219 = vst [vmem:[%s1779_s22 + $0x38] sm:$0xff] %v1218_v16  ;;  %v1252_v13 = vld [vmem:[%s1783_s23 + $0xc0] sm:$0xff]  ;;  %v1254_v28 = vld [vmem:[%s1783_s23 + $0xc8] sm:$0xff]  ;;  %v1256_v10 = vld [vmem:[%s1783_s23 + $0xd0] sm:$0xff] }
 0x1dc   : >> { %1221 = vst [vmem:[%s1779_s22 + $0x40] sm:$0xff] %v1220_v44  ;;  %v1258_v59 = vld [vmem:[%s1783_s23 + $0xd8] sm:$0xff]  ;;  %v1260_v53 = vld [vmem:[%s1783_s23 + $0xe0] sm:$0xff]  ;;  %v1262_v17 = vld [vmem:[%s1783_s23 + $0xe8] sm:$0xff] }
 0x1dd   : >> { %1223 = vst [vmem:[%s1779_s22 + $0x48] sm:$0xff] %v1222_v8  ;;  %v1264_v42 = vld [vmem:[%s1783_s23 + $0xf0] sm:$0xff]  ;;  %v1266_v1 = vld [vmem:[%s1783_s23 + $0xf8] sm:$0xff]  ;;  %s2783_s23 = smov %s2644_s28 }
 0x1de   : >> { %1225 = vst [vmem:[%s1779_s22 + $0x50] sm:$0xff] %v1224_v41 }
 0x1df   : >> { %1227 = vst [vmem:[%s1779_s22 + $0x58] sm:$0xff] %v1226_v25 }
 0x1e0   : >> { %1229 = vst [vmem:[%s1779_s22 + $0x60] sm:$0xff] %v1228_v12 }
 0x1e1   : >> { %1231 = vst [vmem:[%s1779_s22 + $0x68] sm:$0xff] %v1230_v46 }
 0x1e2   : >> { %1233 = vst [vmem:[%s1779_s22 + $0x70] sm:$0xff] %v1232_v32 }
 0x1e3   : >> { %1235 = vst [vmem:[%s1779_s22 + $0x78] sm:$0xff] %v1234_v39 }
 0x1e4   : >> { %1237 = vst [vmem:[%s1779_s22 + $0x80] sm:$0xff] %v1236_v52 }
 0x1e5   : >> { %1239 = vst [vmem:[%s1779_s22 + $0x88] sm:$0xff] %v1238_v49 }
 0x1e6   : >> { %1241 = vst [vmem:[%s1779_s22 + $0x90] sm:$0xff] %v1240_v33 }
 0x1e7   : >> { %1243 = vst [vmem:[%s1779_s22 + $0x98] sm:$0xff] %v1242_v40 }
 0x1e8   : >> { %1245 = vst [vmem:[%s1779_s22 + $0xa0] sm:$0xff] %v1244_v57 }
 0x1e9   : >> { %1247 = vst [vmem:[%s1779_s22 + $0xa8] sm:$0xff] %v1246_v9 }
 0x1ea   : >> { %1249 = vst [vmem:[%s1779_s22 + $0xb0] sm:$0xff] %v1248_v14 }
 0x1eb   : >> { %1251 = vst [vmem:[%s1779_s22 + $0xb8] sm:$0xff] %v1250_v20 }
 0x1ec   : >> { %1253 = vst [vmem:[%s1779_s22 + $0xc0] sm:$0xff] %v1252_v13 }
 0x1ed   : >> { %1255 = vst [vmem:[%s1779_s22 + $0xc8] sm:$0xff] %v1254_v28 }
 0x1ee   : >> { %1257 = vst [vmem:[%s1779_s22 + $0xd0] sm:$0xff] %v1256_v10 }
 0x1ef   : >> { %1259 = vst [vmem:[%s1779_s22 + $0xd8] sm:$0xff] %v1258_v59  ;;  %1200 = sbr.rel (!%p1197_p7) target bundleno = 467 (0x1d3), region = 168 }
 0x1f0   : >> { %1261 = vst [vmem:[%s1779_s22 + $0xe0] sm:$0xff] %v1260_v53 }
 0x1f1   : >> { %1263 = vst [vmem:[%s1779_s22 + $0xe8] sm:$0xff] %v1262_v17 }
 0x1f2   : >> { %1265 = vst [vmem:[%s1779_s22 + $0xf0] sm:$0xff] %v1264_v42 }
 0x1f3   : >> { %1267 = vst [vmem:[%s1779_s22 + $0xf8] sm:$0xff] %v1266_v1  ;;  %s2782_s22 = smov %s2647_s29 }
 0x1f4 PF: > { %s2713_s30 = sand.u32 31, %s1193_s17   ;;  %s1491_s4 = sshll.u32 %s2601_s21, 8 }
 0x1f5   : > { %s1279_s6 = scalar_lea.vmem %s2443_s5, %s1491_s4 [#allocation2]   ;;  %s1281_s7 = scalar_lea.vmem %s2454_s11, %s1491_s4  }
 0x1f6   : > { %p1480_p8 = scmp.le.s32.totalorder %s2713_s30, 0 }
 0x1f7   : > { %s1793_s8 = smov (!%p1480_p8), %s1281_s7   ;;  %s1797_s9 = smov (!%p1480_p8), %s1279_s6  }
 0x1f8   : > { %1420 = sbr.rel (%p1480_p8) target bundleno = 517 (0x205), region = 173  ;;  %s1801_s10 = smov (!%p1480_p8), 0  }
 0x1f9   : > { %s1805_s26 = smov (!%p1480_p8), 0  }
 0x1fd LB: >> { %v1291_v35 = vld [vmem:[%s1799_s9] sm:$0xff]  ;;  %s1293_s17 = sadd.s32 1, %s1803_s10  ;;  %s1285_s26 = sadd.s32 1, %s1807_s26   ;;  %s1807_s26 = sphi %s1805_s26, %s1285_s26   ;;  %s1803_s10 = sphi %s1801_s10, %s1802_s10   ;;  %s1799_s9 = sphi %s1797_s9, %s1298_s9   ;;  %s1795_s8 = sphi %s1793_s8, %s1299_s8  }
 0x1fe   : >> { %1292 = vst [vmem:[%s1795_s8] sm:$0xff] %v1291_v35  ;;  %p1294_p9 = scmp.ge.s32.totalorder %s1293_s17, %s2713_s30  ;;  %p1284_p10 = scmp.ge.s32.totalorder %s1285_s26, %s2713_s30 }
 0x200   : >> { %s2799_s17 = smov (%p1294_p9, %s1293_s17), 0  ;;  %1287 = sbr.rel (!%p1284_p10) target bundleno = 509 (0x1fd), region = 179 }
 0x201   : >> { %s1481_s21 = sshll.u32 %s2799_s17, 3  ;;  %s1802_s10 = smov %s2799_s17  }
 0x202   : >> { %s1298_s9 = scalar_lea.vmem %s1279_s6, %s1481_s21 [#allocation2]   ;;  %s1299_s8 = scalar_lea.vmem %s1281_s7, %s1481_s21  }
 0x205 PF: > { %s1810_s22 = smov 1  }
 0x206   : > { %s1300_s23 = sshll.u32 %s1810_s22, %s2461_s14 }
 0x207   : > { %s1483_s24 = sadd.s32 4294967295, %s1300_s23 }
 0x208   : > { %v1310_v60 = vld [vmem:[%s1190_s18] sm:%s1483_s24] }
 0x209   : > { %1311 = vst [vmem:[%s1192_s20] sm:%s1483_s24] %v1310_v60 }
 0x20a PF: > { %p1484_p11 = scmp.ge.u32.totalorder %s2456_s12, 8 }
 0x20b   : > { %s1811_s25 = smov (!%p1484_p11), 1  }
 0x20c   : > { %1060 = sbr.rel (%p1484_p11) target bundleno = 531 (0x213), region = 48  ;;  %s1061_s27 = sshll.u32 (!%p1484_p11), %s1811_s25, %s2456_s12 }
 0x20d   : > { %s1485_s28 = sadd.s32 (!%p1484_p11), 4294967295, %s1061_s27 }
 0x211   : > { %v1071_v23 = vld [vmem:[%s2443_s5] sm:%s1485_s28] }
 0x212   : > { %1072 = vst [vmem:[%s2454_s11] sm:%s1485_s28] %v1071_v23 }
 0x213 PF: > { %p10_p12 = scmp.ge.s32.totalorder %s1847_s16, 4   ;;  %s2785_s12 = smov %s1739_s13 }
 0x214   : > { %s2786_s13 = smov %s1855_s19  ;;  %s2787_s14 = smov %s1847_s16 }
 0x215   :  { %12 = sbr.rel (!%p10_p12) target bundleno = 2 (0x2), region = 190 }

</bundles_post_ra>
